<compile_context>
chip_gen: v5e
topology: v5e:2x2
jax: 0.10.0
libtpu: 0.0.40
codegen_flags: <defaults>
</compile_context>

<pallas_src>
import jax
import jax.numpy as jnp
from jax.experimental import pallas as pl
from jax.experimental.pallas import tpu as pltpu

D_MODEL = 96
NHEAD = 8
HEAD_DIM = D_MODEL // NHEAD          # 12
D_FF = 2048                          # PyTorch TransformerEncoderLayer default
LN_EPS = 1e-5
TARGET_M = 512                       # rows fed to the MXU per grid step


def _layernorm(x, w, b):
    # PyTorch LayerNorm: biased variance, eps inside the sqrt.
    mean = jnp.mean(x, axis=-1, keepdims=True)
    var = jnp.mean((x - mean) ** 2, axis=-1, keepdims=True)
    return (x - mean) * jax.lax.rsqrt(var + LN_EPS) * w + b


def fusion_kernel(x_ref,
                  wqkv_ref, bqkv_ref, wo_ref, bo_ref,
                  ln1_w_ref, ln1_b_ref,
                  w1_ref, b1_ref, w2_ref, b2_ref,
                  ln2_w_ref, ln2_b_ref,
                  o_ref):
    BB, S, D = x_ref.shape
    M = BB * S
    G = NHEAD * BB                                     # head-major groups, g = h*BB + b

    x = x_ref[...]                                     # (BB, S, 96) f32
    xm = x.reshape(M, D)                               # (M, 96) f32 (residual path)
    xb = xm.astype(jnp.bfloat16)

    # ---- fused QKV projection: one lane-dense matmul, scale already folded into Q ----
    qkv = jnp.dot(xb, wqkv_ref[...],
                  preferred_element_type=jnp.float32) + bqkv_ref[...]   # (M, 288) f32

    # split into per-head views: static lane slices -> leading head axis (no MXU work)
    def split_heads(base):
        slabs = [qkv[:, base + h * HEAD_DIM: base + (h + 1) * HEAD_DIM]
                 for h in range(NHEAD)]                # 8 x (M, 12)
        t = jnp.stack(slabs, axis=0)                   # (H, M, 12)
        return t.reshape(G, S, HEAD_DIM).astype(jnp.bfloat16)

    q3 = split_heads(0)                                # (G, S, 12) bf16
    k3 = split_heads(D_MODEL)
    v3 = split_heads(2 * D_MODEL)

    # ---- attention (heads/batch folded into one batched axis) ----
    s = jnp.einsum('gqe,gke->gqk', q3, k3,
                   preferred_element_type=jnp.float32)                  # (G, S, S)
    s = s - jnp.max(s, axis=-1, keepdims=True)
    p = jnp.exp(s)
    p = p * pl.reciprocal(jnp.sum(p, axis=-1, keepdims=True), approx=True)
    ctx = jnp.einsum('gqk,gke->gqe', p.astype(jnp.bfloat16), v3,
                     preferred_element_type=jnp.float32)                # (G, S, 12)

    # ---- fused output projection: lane-concat heads -> (M, 96), one K=96 matmul ----
    ctx_h = ctx.reshape(NHEAD, M, HEAD_DIM)                             # (H, M, 12)
    ctx_m = jnp.concatenate([ctx_h[h] for h in range(NHEAD)], axis=-1)  # (M, 96)
    attn = jnp.dot(ctx_m.astype(jnp.bfloat16), wo_ref[...],
                   preferred_element_type=jnp.float32) + bo_ref[...]    # (M, 96)

    # ---- residual + LayerNorm1 (post-LN; dropout == identity) ----
    h1 = _layernorm(xm + attn, ln1_w_ref[...], ln1_b_ref[...])

    # ---- feed-forward: Linear(96->2048) -> ReLU -> Linear(2048->96) ----
    ff = jnp.dot(h1.astype(jnp.bfloat16), w1_ref[...],
                 preferred_element_type=jnp.float32) + b1_ref[...]      # (M, 2048)
    ff = jnp.maximum(ff, 0.0)
    ff = jnp.dot(ff.astype(jnp.bfloat16), w2_ref[...],
                 preferred_element_type=jnp.float32) + b2_ref[...]      # (M, 96)

    # ---- residual + LayerNorm2 ----
    y = _layernorm(h1 + ff, ln2_w_ref[...], ln2_b_ref[...])
    o_ref[...] = y.reshape(BB, S, D)


def _prep_params(params):
    """Pre-transpose / fuse weights; fold 1/sqrt(head_dim) into Q; bf16 matmul weights."""
    scale = 1.0 / (HEAD_DIM ** 0.5)

    in_w = params['in_proj_w']                          # (288, 96)  torch (out, in)
    in_b = params['in_proj_b']                          # (288,)  layout [q(96)|k(96)|v(96)]

    scale_vec = jnp.concatenate(
        [jnp.full((D_MODEL,), scale, jnp.float32),
         jnp.ones((2 * D_MODEL,), jnp.float32)])        # scale Q columns only
    wqkv = (in_w.T * scale_vec[None, :]).astype(jnp.bfloat16)          # (96, 288)
    bqkv = (in_b * scale_vec).reshape(1, 3 * D_MODEL).astype(jnp.float32)

    wo = params['out_proj_w'].T.astype(jnp.bfloat16)                   # (96, 96)
    bo = params['out_proj_b'].reshape(1, D_MODEL).astype(jnp.float32)

    w1 = params['w1'].T.astype(jnp.bfloat16)                           # (96, 2048)
    b1 = params['b1'].reshape(1, D_FF).astype(jnp.float32)
    w2 = params['w2'].T.astype(jnp.bfloat16)                           # (2048, 96)
    b2 = params['b2'].reshape(1, D_MODEL).astype(jnp.float32)

    ln1_w = params['ln1_w'].reshape(1, D_MODEL).astype(jnp.float32)
    ln1_b = params['ln1_b'].reshape(1, D_MODEL).astype(jnp.float32)
    ln2_w = params['ln2_w'].reshape(1, D_MODEL).astype(jnp.float32)
    ln2_b = params['ln2_b'].reshape(1, D_MODEL).astype(jnp.float32)

    return (wqkv, bqkv, wo, bo, ln1_w, ln1_b, w1, b1, w2, b2, ln2_w, ln2_b)


def fusion_layer(x1, x2, x3, params):
    # concat along feature dim (PyTorch dim=2)
    x = jnp.concatenate((x1, x2, x3), axis=2).astype(jnp.float32)      # (B, S, 96)
    B, S, D = x.shape
    assert D == D_MODEL

    # batch blocking: M = bb*S rows per grid step (~TARGET_M), but always >= 2 grid
    # blocks when B > 1 so the "parallel" axis can shard across v7x's two TensorCores.
    bb = min(B, max(1, TARGET_M // S))
    bb = max(1, min(bb, pl.cdiv(B, 2)))
    n_blocks = pl.cdiv(B, bb)
    B_pad = n_blocks * bb
    if B_pad != B:
        x = jnp.pad(x, ((0, B_pad - B), (0, 0), (0, 0)))

    weights = _prep_params(params)
    ins = (x,) + weights

    def const_spec(a):
        nd = a.ndim
        return pl.BlockSpec(a.shape, lambda b, _nd=nd: (0,) * _nd)

    in_specs = [pl.BlockSpec((bb, S, D), lambda b: (b, 0, 0))] + \
               [const_spec(a) for a in weights]

    y = pl.pallas_call(
        fusion_kernel,
        out_shape=jax.ShapeDtypeStruct((B_pad, S, D), jnp.float32),
        grid=(n_blocks,),
        in_specs=in_specs,
        out_specs=pl.BlockSpec((bb, S, D), lambda b: (b, 0, 0)),
        compiler_params=pltpu.CompilerParams(
            dimension_semantics=("parallel",),
            vmem_limit_bytes=48 * 1024 * 1024),
    )(*ins)

    # x.reshape(x.size(0), -1)  (free metadata reshape outside the kernel)
    return y[:B].reshape(B, S * D)


def fusion_reference(x1, x2, x3, params):
    """Pure-JAX f32 reference matching PyTorch TransformerEncoderLayer (eval)."""
    x = jnp.concatenate((x1, x2, x3), axis=2).astype(jnp.float32)
    B, S, D = x.shape
    qkv = x @ params['in_proj_w'].T + params['in_proj_b']
    q, k, v = (qkv[..., 0:D_MODEL], qkv[..., D_MODEL:2 * D_MODEL],
               qkv[..., 2 * D_MODEL:3 * D_MODEL])

    def split_heads(t):
        return t.reshape(B, S, NHEAD, HEAD_DIM).transpose(0, 2, 1, 3)

    qh, kh, vh = split_heads(q), split_heads(k), split_heads(v)
    s = jnp.einsum('bhqe,bhke->bhqk', qh, kh) / (HEAD_DIM ** 0.5)
    p = jax.nn.softmax(s, axis=-1)
    ctx = jnp.einsum('bhqk,bhke->bhqe', p, vh)
    ctx = ctx.transpose(0, 2, 1, 3).reshape(B, S, D)
    attn = ctx @ params['out_proj_w'].T + params['out_proj_b']

    def ln(t, w, b):
        m = t.mean(-1, keepdims=True)
        var = ((t - m) ** 2).mean(-1, keepdims=True)
        return (t - m) * jax.lax.rsqrt(var + LN_EPS) * w + b

    h1 = ln(x + attn, params['ln1_w'], params['ln1_b'])
    ff = jnp.maximum(h1 @ params['w1'].T + params['b1'], 0.0)
    ff = ff @ params['w2'].T + params['b2']
    y = ln(h1 + ff, params['ln2_w'], params['ln2_b'])
    return y.reshape(B, S * D)


def init_params(key):
    ks = jax.random.split(key, 8)
    s = 0.05
    return dict(
        in_proj_w=jax.random.normal(ks[0], (3 * D_MODEL, D_MODEL), jnp.float32) * s,
        in_proj_b=jax.random.normal(ks[1], (3 * D_MODEL,), jnp.float32) * s,
        out_proj_w=jax.random.normal(ks[2], (D_MODEL, D_MODEL), jnp.float32) * s,
        out_proj_b=jax.random.normal(ks[3], (D_MODEL,), jnp.float32) * s,
        ln1_w=jnp.ones((D_MODEL,), jnp.float32),
        ln1_b=jnp.zeros((D_MODEL,), jnp.float32),
        w1=jax.random.normal(ks[4], (D_FF, D_MODEL), jnp.float32) * s,
        b1=jax.random.normal(ks[5], (D_FF,), jnp.float32) * s,
        w2=jax.random.normal(ks[6], (D_MODEL, D_FF), jnp.float32) * s,
        b2=jax.random.normal(ks[7], (D_MODEL,), jnp.float32) * s,
        ln2_w=jnp.ones((D_MODEL,), jnp.float32),
        ln2_b=jnp.zeros((D_MODEL,), jnp.float32),
    )


if __name__ == "__main__":
    key = jax.random.PRNGKey(0)
    k1, k2, k3, kp = jax.random.split(key, 4)
    B, S = 2, 8
    # x1/x2/x3 feature dims sum to d_model=96 -> 32 each
    x1 = jax.random.normal(k1, (B, S, 32), jnp.float32)
    x2 = jax.random.normal(k2, (B, S, 32), jnp.float32)
    x3 = jax.random.normal(k3, (B, S, 32), jnp.float32)
    params = init_params(kp)

    out = fusion_layer(x1, x2, x3, params)
    jax.block_until_ready(out)
    assert out.shape == (B, S * D_MODEL), out.shape

    # correctness vs f32 reference (bf16 MXU inputs -> loose tolerance)
    ref = fusion_reference(x1, x2, x3, params)
    err = float(jnp.max(jnp.abs(out - ref)))
    assert jnp.allclose(out, ref, atol=5e-2, rtol=5e-2), err

    print("KERNEL_OK")
</pallas_src>

<mosaic_0001>
module attributes {stable_mosaic.version = 11 : i64} {
  func.func @fusion_kernel(%arg0: i32, %arg1: memref<1x8x96xf32, #tpu.memory_space<vmem>>, %arg2: memref<96x288xbf16, #tpu.memory_space<vmem>>, %arg3: memref<1x288xf32, #tpu.memory_space<vmem>>, %arg4: memref<96x96xbf16, #tpu.memory_space<vmem>>, %arg5: memref<1x96xf32, #tpu.memory_space<vmem>>, %arg6: memref<1x96xf32, #tpu.memory_space<vmem>>, %arg7: memref<1x96xf32, #tpu.memory_space<vmem>>, %arg8: memref<96x2048xbf16, #tpu.memory_space<vmem>>, %arg9: memref<1x2048xf32, #tpu.memory_space<vmem>>, %arg10: memref<2048x96xbf16, #tpu.memory_space<vmem>>, %arg11: memref<1x96xf32, #tpu.memory_space<vmem>>, %arg12: memref<1x96xf32, #tpu.memory_space<vmem>>, %arg13: memref<1x96xf32, #tpu.memory_space<vmem>>, %arg14: memref<1x8x96xf32, #tpu.memory_space<vmem>>) attributes {dimension_semantics = [#tpu.dimension_semantics<parallel>], iteration_bounds = array<i64: 2>, scalar_prefetch = 0 : i64, scratch_operands = 0 : i64, tpu.core_type = #tpu.core_type<tc>, window_params = [{transform_indices = @transform_0, window_bounds = array<i64: 1, 8, 96>}, {pipeline_mode = #tpu.pipeline_mode<synchronous>, transform_indices = @transform_1, window_bounds = array<i64: 96, 288>}, {pipeline_mode = #tpu.pipeline_mode<synchronous>, transform_indices = @transform_2, window_bounds = array<i64: 1, 288>}, {pipeline_mode = #tpu.pipeline_mode<synchronous>, transform_indices = @transform_3, window_bounds = array<i64: 96, 96>}, {pipeline_mode = #tpu.pipeline_mode<synchronous>, transform_indices = @transform_4, window_bounds = array<i64: 1, 96>}, {pipeline_mode = #tpu.pipeline_mode<synchronous>, transform_indices = @transform_5, window_bounds = array<i64: 1, 96>}, {pipeline_mode = #tpu.pipeline_mode<synchronous>, transform_indices = @transform_6, window_bounds = array<i64: 1, 96>}, {pipeline_mode = #tpu.pipeline_mode<synchronous>, transform_indices = @transform_7, window_bounds = array<i64: 96, 2048>}, {pipeline_mode = #tpu.pipeline_mode<synchronous>, transform_indices = @transform_8, window_bounds = array<i64: 1, 2048>}, {pipeline_mode = #tpu.pipeline_mode<synchronous>, transform_indices = @transform_9, window_bounds = array<i64: 2048, 96>}, {pipeline_mode = #tpu.pipeline_mode<synchronous>, transform_indices = @transform_10, window_bounds = array<i64: 1, 96>}, {pipeline_mode = #tpu.pipeline_mode<synchronous>, transform_indices = @transform_11, window_bounds = array<i64: 1, 96>}, {pipeline_mode = #tpu.pipeline_mode<synchronous>, transform_indices = @transform_12, window_bounds = array<i64: 1, 96>}, {transform_indices = @transform_13, window_bounds = array<i64: 1, 8, 96>}]} {
    %c0 = arith.constant 0 : index
    %c0_0 = arith.constant 0 : index
    %c0_1 = arith.constant 0 : index
    %0 = vector.load %arg1[%c0, %c0_0, %c0_1] : memref<1x8x96xf32, #tpu.memory_space<vmem>>, vector<1x8x96xf32>
    %1 = vector.shape_cast %0 : vector<1x8x96xf32> to vector<8x96xf32>
    %2 = arith.truncf %1 : vector<8x96xf32> to vector<8x96xbf16>
    %c0_2 = arith.constant 0 : index
    %c0_3 = arith.constant 0 : index
    %3 = vector.load %arg2[%c0_2, %c0_3] : memref<96x288xbf16, #tpu.memory_space<vmem>>, vector<96x288xbf16>
    %cst = arith.constant dense<0.000000e+00> : vector<8x288xf32>
    %4 = tpu.matmul %2, %3, %cst {dimension_numbers = #tpu.dot_dimension_numbers<[1], [0], [0], [1], [0, 0, 1, 1], [], []>} : vector<8x96xbf16>, vector<96x288xbf16>, vector<8x288xf32> -> vector<8x288xf32>
    %c0_4 = arith.constant 0 : index
    %c0_5 = arith.constant 0 : index
    %5 = vector.load %arg3[%c0_4, %c0_5] : memref<1x288xf32, #tpu.memory_space<vmem>>, vector<1x288xf32>
    %6 = vector.broadcast %5 : vector<1x288xf32> to vector<8x288xf32>
    %7 = arith.addf %4, %6 : vector<8x288xf32>
    %8 = vector.extract_strided_slice %7 {offsets = [0, 0], sizes = [8, 12], strides = [1, 1]} : vector<8x288xf32> to vector<8x12xf32>
    %9 = vector.extract_strided_slice %7 {offsets = [0, 12], sizes = [8, 12], strides = [1, 1]} : vector<8x288xf32> to vector<8x12xf32>
    %10 = vector.extract_strided_slice %7 {offsets = [0, 24], sizes = [8, 12], strides = [1, 1]} : vector<8x288xf32> to vector<8x12xf32>
    %11 = vector.extract_strided_slice %7 {offsets = [0, 36], sizes = [8, 12], strides = [1, 1]} : vector<8x288xf32> to vector<8x12xf32>
    %12 = vector.extract_strided_slice %7 {offsets = [0, 48], sizes = [8, 12], strides = [1, 1]} : vector<8x288xf32> to vector<8x12xf32>
    %13 = vector.extract_strided_slice %7 {offsets = [0, 60], sizes = [8, 12], strides = [1, 1]} : vector<8x288xf32> to vector<8x12xf32>
    %14 = vector.extract_strided_slice %7 {offsets = [0, 72], sizes = [8, 12], strides = [1, 1]} : vector<8x288xf32> to vector<8x12xf32>
    %15 = vector.extract_strided_slice %7 {offsets = [0, 84], sizes = [8, 12], strides = [1, 1]} : vector<8x288xf32> to vector<8x12xf32>
    %16 = vector.shape_cast %8 : vector<8x12xf32> to vector<1x8x12xf32>
    %17 = vector.shape_cast %9 : vector<8x12xf32> to vector<1x8x12xf32>
    %18 = vector.shape_cast %10 : vector<8x12xf32> to vector<1x8x12xf32>
    %19 = vector.shape_cast %11 : vector<8x12xf32> to vector<1x8x12xf32>
    %20 = vector.shape_cast %12 : vector<8x12xf32> to vector<1x8x12xf32>
    %21 = vector.shape_cast %13 : vector<8x12xf32> to vector<1x8x12xf32>
    %22 = vector.shape_cast %14 : vector<8x12xf32> to vector<1x8x12xf32>
    %23 = vector.shape_cast %15 : vector<8x12xf32> to vector<1x8x12xf32>
    %24 = tpu.concatenate %16, %17, %18, %19, %20, %21, %22, %23 in 0 : vector<1x8x12xf32>, vector<1x8x12xf32>, vector<1x8x12xf32>, vector<1x8x12xf32>, vector<1x8x12xf32>, vector<1x8x12xf32>, vector<1x8x12xf32>, vector<1x8x12xf32> -> vector<8x8x12xf32>
    %25 = arith.truncf %24 : vector<8x8x12xf32> to vector<8x8x12xbf16>
    %26 = vector.extract_strided_slice %7 {offsets = [0, 96], sizes = [8, 12], strides = [1, 1]} : vector<8x288xf32> to vector<8x12xf32>
    %27 = vector.extract_strided_slice %7 {offsets = [0, 108], sizes = [8, 12], strides = [1, 1]} : vector<8x288xf32> to vector<8x12xf32>
    %28 = vector.extract_strided_slice %7 {offsets = [0, 120], sizes = [8, 12], strides = [1, 1]} : vector<8x288xf32> to vector<8x12xf32>
    %29 = vector.extract_strided_slice %7 {offsets = [0, 132], sizes = [8, 12], strides = [1, 1]} : vector<8x288xf32> to vector<8x12xf32>
    %30 = vector.extract_strided_slice %7 {offsets = [0, 144], sizes = [8, 12], strides = [1, 1]} : vector<8x288xf32> to vector<8x12xf32>
    %31 = vector.extract_strided_slice %7 {offsets = [0, 156], sizes = [8, 12], strides = [1, 1]} : vector<8x288xf32> to vector<8x12xf32>
    %32 = vector.extract_strided_slice %7 {offsets = [0, 168], sizes = [8, 12], strides = [1, 1]} : vector<8x288xf32> to vector<8x12xf32>
    %33 = vector.extract_strided_slice %7 {offsets = [0, 180], sizes = [8, 12], strides = [1, 1]} : vector<8x288xf32> to vector<8x12xf32>
    %34 = vector.shape_cast %26 : vector<8x12xf32> to vector<1x8x12xf32>
    %35 = vector.shape_cast %27 : vector<8x12xf32> to vector<1x8x12xf32>
    %36 = vector.shape_cast %28 : vector<8x12xf32> to vector<1x8x12xf32>
    %37 = vector.shape_cast %29 : vector<8x12xf32> to vector<1x8x12xf32>
    %38 = vector.shape_cast %30 : vector<8x12xf32> to vector<1x8x12xf32>
    %39 = vector.shape_cast %31 : vector<8x12xf32> to vector<1x8x12xf32>
    %40 = vector.shape_cast %32 : vector<8x12xf32> to vector<1x8x12xf32>
    %41 = vector.shape_cast %33 : vector<8x12xf32> to vector<1x8x12xf32>
    %42 = tpu.concatenate %34, %35, %36, %37, %38, %39, %40, %41 in 0 : vector<1x8x12xf32>, vector<1x8x12xf32>, vector<1x8x12xf32>, vector<1x8x12xf32>, vector<1x8x12xf32>, vector<1x8x12xf32>, vector<1x8x12xf32>, vector<1x8x12xf32> -> vector<8x8x12xf32>
    %43 = arith.truncf %42 : vector<8x8x12xf32> to vector<8x8x12xbf16>
    %44 = vector.extract_strided_slice %7 {offsets = [0, 192], sizes = [8, 12], strides = [1, 1]} : vector<8x288xf32> to vector<8x12xf32>
    %45 = vector.extract_strided_slice %7 {offsets = [0, 204], sizes = [8, 12], strides = [1, 1]} : vector<8x288xf32> to vector<8x12xf32>
    %46 = vector.extract_strided_slice %7 {offsets = [0, 216], sizes = [8, 12], strides = [1, 1]} : vector<8x288xf32> to vector<8x12xf32>
    %47 = vector.extract_strided_slice %7 {offsets = [0, 228], sizes = [8, 12], strides = [1, 1]} : vector<8x288xf32> to vector<8x12xf32>
    %48 = vector.extract_strided_slice %7 {offsets = [0, 240], sizes = [8, 12], strides = [1, 1]} : vector<8x288xf32> to vector<8x12xf32>
    %49 = vector.extract_strided_slice %7 {offsets = [0, 252], sizes = [8, 12], strides = [1, 1]} : vector<8x288xf32> to vector<8x12xf32>
    %50 = vector.extract_strided_slice %7 {offsets = [0, 264], sizes = [8, 12], strides = [1, 1]} : vector<8x288xf32> to vector<8x12xf32>
    %51 = vector.extract_strided_slice %7 {offsets = [0, 276], sizes = [8, 12], strides = [1, 1]} : vector<8x288xf32> to vector<8x12xf32>
    %52 = vector.shape_cast %44 : vector<8x12xf32> to vector<1x8x12xf32>
    %53 = vector.shape_cast %45 : vector<8x12xf32> to vector<1x8x12xf32>
    %54 = vector.shape_cast %46 : vector<8x12xf32> to vector<1x8x12xf32>
    %55 = vector.shape_cast %47 : vector<8x12xf32> to vector<1x8x12xf32>
    %56 = vector.shape_cast %48 : vector<8x12xf32> to vector<1x8x12xf32>
    %57 = vector.shape_cast %49 : vector<8x12xf32> to vector<1x8x12xf32>
    %58 = vector.shape_cast %50 : vector<8x12xf32> to vector<1x8x12xf32>
    %59 = vector.shape_cast %51 : vector<8x12xf32> to vector<1x8x12xf32>
    %60 = tpu.concatenate %52, %53, %54, %55, %56, %57, %58, %59 in 0 : vector<1x8x12xf32>, vector<1x8x12xf32>, vector<1x8x12xf32>, vector<1x8x12xf32>, vector<1x8x12xf32>, vector<1x8x12xf32>, vector<1x8x12xf32>, vector<1x8x12xf32> -> vector<8x8x12xf32>
    %61 = arith.truncf %60 : vector<8x8x12xf32> to vector<8x8x12xbf16>
    "tpu.trace_start"() <{level = 10 : i32, message = "gqe,gke->gqk"}> : () -> ()
    %cst_6 = arith.constant dense<0.000000e+00> : vector<8x8x8xf32>
    %62 = tpu.matmul %25, %43, %cst_6 {dimension_numbers = #tpu.dot_dimension_numbers<[2], [2], [1], [1], [0, 0, 0, 1, 1, 1], [0], [0]>} : vector<8x8x12xbf16>, vector<8x8x12xbf16>, vector<8x8x8xf32> -> vector<8x8x8xf32>
    "tpu.trace_stop"() : () -> ()
    %cst_7 = arith.constant dense<0xFF800000> : vector<8x8xf32>
    %63 = vector.multi_reduction <maximumf>, %62, %cst_7 [2] : vector<8x8x8xf32> to vector<8x8xf32>
    %64 = vector.shape_cast %63 : vector<8x8xf32> to vector<8x8x1xf32>
    %65 = vector.broadcast %64 : vector<8x8x1xf32> to vector<8x8x8xf32>
    %66 = arith.subf %62, %65 : vector<8x8x8xf32>
    %67 = math.exp %66 : vector<8x8x8xf32>
    %cst_8 = arith.constant dense<0.000000e+00> : vector<8x8xf32>
    %68 = vector.multi_reduction <add>, %67, %cst_8 [2] : vector<8x8x8xf32> to vector<8x8xf32>
    %69 = vector.shape_cast %68 : vector<8x8xf32> to vector<8x8x1xf32>
    %70 = tpu.reciprocal %69 {approx = true} : vector<8x8x1xf32> -> vector<8x8x1xf32>
    %71 = vector.broadcast %70 : vector<8x8x1xf32> to vector<8x8x8xf32>
    %72 = arith.mulf %67, %71 : vector<8x8x8xf32>
    %73 = arith.truncf %72 : vector<8x8x8xf32> to vector<8x8x8xbf16>
    "tpu.trace_start"() <{level = 10 : i32, message = "gqk,gke->gqe"}> : () -> ()
    %cst_9 = arith.constant dense<0.000000e+00> : vector<8x8x12xf32>
    %74 = tpu.matmul %73, %61, %cst_9 {dimension_numbers = #tpu.dot_dimension_numbers<[2], [1], [1], [2], [0, 0, 0, 1, 1, 2], [0], [0]>} : vector<8x8x8xbf16>, vector<8x8x12xbf16>, vector<8x8x12xf32> -> vector<8x8x12xf32>
    "tpu.trace_stop"() : () -> ()
    %75 = vector.extract_strided_slice %74 {offsets = [0, 0, 0], sizes = [1, 8, 12], strides = [1, 1, 1]} : vector<8x8x12xf32> to vector<1x8x12xf32>
    %76 = vector.shape_cast %75 : vector<1x8x12xf32> to vector<8x12xf32>
    %77 = vector.extract_strided_slice %74 {offsets = [1, 0, 0], sizes = [1, 8, 12], strides = [1, 1, 1]} : vector<8x8x12xf32> to vector<1x8x12xf32>
    %78 = vector.shape_cast %77 : vector<1x8x12xf32> to vector<8x12xf32>
    %79 = vector.extract_strided_slice %74 {offsets = [2, 0, 0], sizes = [1, 8, 12], strides = [1, 1, 1]} : vector<8x8x12xf32> to vector<1x8x12xf32>
    %80 = vector.shape_cast %79 : vector<1x8x12xf32> to vector<8x12xf32>
    %81 = vector.extract_strided_slice %74 {offsets = [3, 0, 0], sizes = [1, 8, 12], strides = [1, 1, 1]} : vector<8x8x12xf32> to vector<1x8x12xf32>
    %82 = vector.shape_cast %81 : vector<1x8x12xf32> to vector<8x12xf32>
    %83 = vector.extract_strided_slice %74 {offsets = [4, 0, 0], sizes = [1, 8, 12], strides = [1, 1, 1]} : vector<8x8x12xf32> to vector<1x8x12xf32>
    %84 = vector.shape_cast %83 : vector<1x8x12xf32> to vector<8x12xf32>
    %85 = vector.extract_strided_slice %74 {offsets = [5, 0, 0], sizes = [1, 8, 12], strides = [1, 1, 1]} : vector<8x8x12xf32> to vector<1x8x12xf32>
    %86 = vector.shape_cast %85 : vector<1x8x12xf32> to vector<8x12xf32>
    %87 = vector.extract_strided_slice %74 {offsets = [6, 0, 0], sizes = [1, 8, 12], strides = [1, 1, 1]} : vector<8x8x12xf32> to vector<1x8x12xf32>
    %88 = vector.shape_cast %87 : vector<1x8x12xf32> to vector<8x12xf32>
    %89 = vector.extract_strided_slice %74 {offsets = [7, 0, 0], sizes = [1, 8, 12], strides = [1, 1, 1]} : vector<8x8x12xf32> to vector<1x8x12xf32>
    %90 = vector.shape_cast %89 : vector<1x8x12xf32> to vector<8x12xf32>
    %91 = tpu.concatenate %76, %78, %80, %82, %84, %86, %88, %90 in 1 : vector<8x12xf32>, vector<8x12xf32>, vector<8x12xf32>, vector<8x12xf32>, vector<8x12xf32>, vector<8x12xf32>, vector<8x12xf32>, vector<8x12xf32> -> vector<8x96xf32>
    %92 = arith.truncf %91 : vector<8x96xf32> to vector<8x96xbf16>
    %c0_10 = arith.constant 0 : index
    %c0_11 = arith.constant 0 : index
    %93 = vector.load %arg4[%c0_10, %c0_11] : memref<96x96xbf16, #tpu.memory_space<vmem>>, vector<96x96xbf16>
    %cst_12 = arith.constant dense<0.000000e+00> : vector<8x96xf32>
    %94 = tpu.matmul %92, %93, %cst_12 {dimension_numbers = #tpu.dot_dimension_numbers<[1], [0], [0], [1], [0, 0, 1, 1], [], []>} : vector<8x96xbf16>, vector<96x96xbf16>, vector<8x96xf32> -> vector<8x96xf32>
    %c0_13 = arith.constant 0 : index
    %c0_14 = arith.constant 0 : index
    %95 = vector.load %arg5[%c0_13, %c0_14] : memref<1x96xf32, #tpu.memory_space<vmem>>, vector<1x96xf32>
    %96 = vector.broadcast %95 : vector<1x96xf32> to vector<8x96xf32>
    %97 = arith.addf %94, %96 : vector<8x96xf32>
    %98 = arith.addf %1, %97 : vector<8x96xf32>
    %c0_15 = arith.constant 0 : index
    %c0_16 = arith.constant 0 : index
    %99 = vector.load %arg6[%c0_15, %c0_16] : memref<1x96xf32, #tpu.memory_space<vmem>>, vector<1x96xf32>
    %c0_17 = arith.constant 0 : index
    %c0_18 = arith.constant 0 : index
    %100 = vector.load %arg7[%c0_17, %c0_18] : memref<1x96xf32, #tpu.memory_space<vmem>>, vector<1x96xf32>
    %cst_19 = arith.constant dense<0.000000e+00> : vector<8xf32>
    %101 = vector.multi_reduction <add>, %98, %cst_19 [1] : vector<8x96xf32> to vector<8xf32>
    %102 = vector.shape_cast %101 : vector<8xf32> to vector<8x1xf32>
    %cst_20 = arith.constant 9.600000e+01 : f32
    %103 = vector.broadcast %cst_20 : f32 to vector<8x1xf32>
    %104 = arith.divf %102, %103 : vector<8x1xf32>
    %105 = vector.broadcast %104 : vector<8x1xf32> to vector<8x96xf32>
    %106 = arith.subf %98, %105 : vector<8x96xf32>
    %107 = arith.mulf %106, %106 : vector<8x96xf32>
    %cst_21 = arith.constant dense<0.000000e+00> : vector<8xf32>
    %108 = vector.multi_reduction <add>, %107, %cst_21 [1] : vector<8x96xf32> to vector<8xf32>
    %109 = vector.shape_cast %108 : vector<8xf32> to vector<8x1xf32>
    %cst_22 = arith.constant 9.600000e+01 : f32
    %110 = vector.broadcast %cst_22 : f32 to vector<8x1xf32>
    %111 = arith.divf %109, %110 : vector<8x1xf32>
    %112 = vector.broadcast %104 : vector<8x1xf32> to vector<8x96xf32>
    %113 = arith.subf %98, %112 : vector<8x96xf32>
    %cst_23 = arith.constant 9.99999974E-6 : f32
    %114 = vector.broadcast %cst_23 : f32 to vector<8x1xf32>
    %115 = arith.addf %111, %114 : vector<8x1xf32>
    %116 = math.rsqrt %115 : vector<8x1xf32>
    %117 = vector.broadcast %116 : vector<8x1xf32> to vector<8x96xf32>
    %118 = arith.mulf %113, %117 : vector<8x96xf32>
    %119 = vector.broadcast %99 : vector<1x96xf32> to vector<8x96xf32>
    %120 = arith.mulf %118, %119 : vector<8x96xf32>
    %121 = vector.broadcast %100 : vector<1x96xf32> to vector<8x96xf32>
    %122 = arith.addf %120, %121 : vector<8x96xf32>
    %123 = arith.truncf %122 : vector<8x96xf32> to vector<8x96xbf16>
    %c0_24 = arith.constant 0 : index
    %c0_25 = arith.constant 0 : index
    %124 = vector.load %arg8[%c0_24, %c0_25] : memref<96x2048xbf16, #tpu.memory_space<vmem>>, vector<96x2048xbf16>
    %cst_26 = arith.constant dense<0.000000e+00> : vector<8x2048xf32>
    %125 = tpu.matmul %123, %124, %cst_26 {dimension_numbers = #tpu.dot_dimension_numbers<[1], [0], [0], [1], [0, 0, 1, 1], [], []>} : vector<8x96xbf16>, vector<96x2048xbf16>, vector<8x2048xf32> -> vector<8x2048xf32>
    %c0_27 = arith.constant 0 : index
    %c0_28 = arith.constant 0 : index
    %126 = vector.load %arg9[%c0_27, %c0_28] : memref<1x2048xf32, #tpu.memory_space<vmem>>, vector<1x2048xf32>
    %127 = vector.broadcast %126 : vector<1x2048xf32> to vector<8x2048xf32>
    %128 = arith.addf %125, %127 : vector<8x2048xf32>
    %cst_29 = arith.constant 0.000000e+00 : f32
    %129 = vector.broadcast %cst_29 : f32 to vector<8x2048xf32>
    %130 = arith.maximumf %128, %129 : vector<8x2048xf32>
    %131 = arith.truncf %130 : vector<8x2048xf32> to vector<8x2048xbf16>
    %c0_30 = arith.constant 0 : index
    %c0_31 = arith.constant 0 : index
    %132 = vector.load %arg10[%c0_30, %c0_31] : memref<2048x96xbf16, #tpu.memory_space<vmem>>, vector<2048x96xbf16>
    %cst_32 = arith.constant dense<0.000000e+00> : vector<8x96xf32>
    %133 = tpu.matmul %131, %132, %cst_32 {dimension_numbers = #tpu.dot_dimension_numbers<[1], [0], [0], [1], [0, 0, 1, 1], [], []>} : vector<8x2048xbf16>, vector<2048x96xbf16>, vector<8x96xf32> -> vector<8x96xf32>
    %c0_33 = arith.constant 0 : index
    %c0_34 = arith.constant 0 : index
    %134 = vector.load %arg11[%c0_33, %c0_34] : memref<1x96xf32, #tpu.memory_space<vmem>>, vector<1x96xf32>
    %135 = vector.broadcast %134 : vector<1x96xf32> to vector<8x96xf32>
    %136 = arith.addf %133, %135 : vector<8x96xf32>
    %137 = arith.addf %122, %136 : vector<8x96xf32>
    %c0_35 = arith.constant 0 : index
    %c0_36 = arith.constant 0 : index
    %138 = vector.load %arg12[%c0_35, %c0_36] : memref<1x96xf32, #tpu.memory_space<vmem>>, vector<1x96xf32>
    %c0_37 = arith.constant 0 : index
    %c0_38 = arith.constant 0 : index
    %139 = vector.load %arg13[%c0_37, %c0_38] : memref<1x96xf32, #tpu.memory_space<vmem>>, vector<1x96xf32>
    %cst_39 = arith.constant dense<0.000000e+00> : vector<8xf32>
    %140 = vector.multi_reduction <add>, %137, %cst_39 [1] : vector<8x96xf32> to vector<8xf32>
    %141 = vector.shape_cast %140 : vector<8xf32> to vector<8x1xf32>
    %cst_40 = arith.constant 9.600000e+01 : f32
    %142 = vector.broadcast %cst_40 : f32 to vector<8x1xf32>
    %143 = arith.divf %141, %142 : vector<8x1xf32>
    %144 = vector.broadcast %143 : vector<8x1xf32> to vector<8x96xf32>
    %145 = arith.subf %137, %144 : vector<8x96xf32>
    %146 = arith.mulf %145, %145 : vector<8x96xf32>
    %cst_41 = arith.constant dense<0.000000e+00> : vector<8xf32>
    %147 = vector.multi_reduction <add>, %146, %cst_41 [1] : vector<8x96xf32> to vector<8xf32>
    %148 = vector.shape_cast %147 : vector<8xf32> to vector<8x1xf32>
    %cst_42 = arith.constant 9.600000e+01 : f32
    %149 = vector.broadcast %cst_42 : f32 to vector<8x1xf32>
    %150 = arith.divf %148, %149 : vector<8x1xf32>
    %151 = vector.broadcast %143 : vector<8x1xf32> to vector<8x96xf32>
    %152 = arith.subf %137, %151 : vector<8x96xf32>
    %cst_43 = arith.constant 9.99999974E-6 : f32
    %153 = vector.broadcast %cst_43 : f32 to vector<8x1xf32>
    %154 = arith.addf %150, %153 : vector<8x1xf32>
    %155 = math.rsqrt %154 : vector<8x1xf32>
    %156 = vector.broadcast %155 : vector<8x1xf32> to vector<8x96xf32>
    %157 = arith.mulf %152, %156 : vector<8x96xf32>
    %158 = vector.broadcast %138 : vector<1x96xf32> to vector<8x96xf32>
    %159 = arith.mulf %157, %158 : vector<8x96xf32>
    %160 = vector.broadcast %139 : vector<1x96xf32> to vector<8x96xf32>
    %161 = arith.addf %159, %160 : vector<8x96xf32>
    %162 = vector.shape_cast %161 : vector<8x96xf32> to vector<1x8x96xf32>
    %c0_44 = arith.constant 0 : index
    %c0_45 = arith.constant 0 : index
    %c0_46 = arith.constant 0 : index
    %163 = vector.load %arg14[%c0_44, %c0_45, %c0_46] : memref<1x8x96xf32, #tpu.memory_space<vmem>>, vector<1x8x96xf32>
    tpu.vector_store %arg14[%c0_44, %c0_45, %c0_46], %162 {strides = array<i32>} : memref<1x8x96xf32, #tpu.memory_space<vmem>>, vector<1x8x96xf32>,
    return
  }
  func.func @transform_0(%arg0: i32) -> (i32, i32, i32) {
    %c0_i32 = arith.constant 0 : i32
    %c0_i32_0 = arith.constant 0 : i32
    %c0_i32_1 = arith.constant 0 : i32
    return %arg0, %c0_i32, %c0_i32_0 : i32, i32, i32
  }
  func.func @transform_1(%arg0: i32) -> (i32, i32) {
    %c0_i32 = arith.constant 0 : i32
    %c0_i32_0 = arith.constant 0 : i32
    %c0_i32_1 = arith.constant 0 : i32
    return %c0_i32, %c0_i32_0 : i32, i32
  }
  func.func @transform_2(%arg0: i32) -> (i32, i32) {
    %c0_i32 = arith.constant 0 : i32
    %c0_i32_0 = arith.constant 0 : i32
    %c0_i32_1 = arith.constant 0 : i32
    return %c0_i32, %c0_i32_0 : i32, i32
  }
  func.func @transform_3(%arg0: i32) -> (i32, i32) {
    %c0_i32 = arith.constant 0 : i32
    %c0_i32_0 = arith.constant 0 : i32
    %c0_i32_1 = arith.constant 0 : i32
    return %c0_i32, %c0_i32_0 : i32, i32
  }
  func.func @transform_4(%arg0: i32) -> (i32, i32) {
    %c0_i32 = arith.constant 0 : i32
    %c0_i32_0 = arith.constant 0 : i32
    %c0_i32_1 = arith.constant 0 : i32
    return %c0_i32, %c0_i32_0 : i32, i32
  }
  func.func @transform_5(%arg0: i32) -> (i32, i32) {
    %c0_i32 = arith.constant 0 : i32
    %c0_i32_0 = arith.constant 0 : i32
    %c0_i32_1 = arith.constant 0 : i32
    return %c0_i32, %c0_i32_0 : i32, i32
  }
  func.func @transform_6(%arg0: i32) -> (i32, i32) {
    %c0_i32 = arith.constant 0 : i32
    %c0_i32_0 = arith.constant 0 : i32
    %c0_i32_1 = arith.constant 0 : i32
    return %c0_i32, %c0_i32_0 : i32, i32
  }
  func.func @transform_7(%arg0: i32) -> (i32, i32) {
    %c0_i32 = arith.constant 0 : i32
    %c0_i32_0 = arith.constant 0 : i32
    %c0_i32_1 = arith.constant 0 : i32
    return %c0_i32, %c0_i32_0 : i32, i32
  }
  func.func @transform_8(%arg0: i32) -> (i32, i32) {
    %c0_i32 = arith.constant 0 : i32
    %c0_i32_0 = arith.constant 0 : i32
    %c0_i32_1 = arith.constant 0 : i32
    return %c0_i32, %c0_i32_0 : i32, i32
  }
  func.func @transform_9(%arg0: i32) -> (i32, i32) {
    %c0_i32 = arith.constant 0 : i32
    %c0_i32_0 = arith.constant 0 : i32
    %c0_i32_1 = arith.constant 0 : i32
    return %c0_i32, %c0_i32_0 : i32, i32
  }
  func.func @transform_10(%arg0: i32) -> (i32, i32) {
    %c0_i32 = arith.constant 0 : i32
    %c0_i32_0 = arith.constant 0 : i32
    %c0_i32_1 = arith.constant 0 : i32
    return %c0_i32, %c0_i32_0 : i32, i32
  }
  func.func @transform_11(%arg0: i32) -> (i32, i32) {
    %c0_i32 = arith.constant 0 : i32
    %c0_i32_0 = arith.constant 0 : i32
    %c0_i32_1 = arith.constant 0 : i32
    return %c0_i32, %c0_i32_0 : i32, i32
  }
  func.func @transform_12(%arg0: i32) -> (i32, i32) {
    %c0_i32 = arith.constant 0 : i32
    %c0_i32_0 = arith.constant 0 : i32
    %c0_i32_1 = arith.constant 0 : i32
    return %c0_i32, %c0_i32_0 : i32, i32
  }
  func.func @transform_13(%arg0: i32) -> (i32, i32, i32) {
    %c0_i32 = arith.constant 0 : i32
    %c0_i32_0 = arith.constant 0 : i32
    %c0_i32_1 = arith.constant 0 : i32
    return %arg0, %c0_i32, %c0_i32_0 : i32, i32, i32
  }
}

</mosaic_0001>

<bundles_post_ra>
// kernel: tpu_custom_call.1
= control target key start
LH: loop header
LB: loop body
LE: loop exit
PB: predicated region body
PF: predicated region fallthrough
CT: control target
= control target key end

     0   :  { %18 = vsyncpa [#allocation3], 0  ;;  %s6493_s0 = inlined_call_operand.vmem [shape: f32[2,8,96], index: 0, kind: input, shape index: {}]   ;;  %s6494_s1 = inlined_call_operand.vmem [shape: bf16[96,288], index: 1, kind: input, shape index: {}]   ;;  %s6495_s2 = inlined_call_operand.vmem [shape: f32[1,288], index: 2, kind: input, shape index: {}]   ;;  %s6496_s3 = inlined_call_operand.vmem [shape: bf16[96,96], index: 3, kind: input, shape index: {}]   ;;  %s6497_s4 = inlined_call_operand.vmem [shape: f32[1,96], index: 4, kind: input, shape index: {}]   ;;  %s6498_s5 = inlined_call_operand.vmem [shape: f32[1,96], index: 5, kind: input, shape index: {}]   ;;  %s6499_s6 = inlined_call_operand.vmem [shape: f32[1,96], index: 6, kind: input, shape index: {}]   ;;  %s6500_s7 = inlined_call_operand.vmem [shape: bf16[96,2048], index: 7, kind: input, shape index: {}]   ;;  %s6501_s8 = inlined_call_operand.vmem [shape: f32[1,2048], index: 8, kind: input, shape index: {}]   ;;  %s6502_s9 = inlined_call_operand.vmem [shape: bf16[2048,96], index: 9, kind: input, shape index: {}]   ;;  %s6503_s10 = inlined_call_operand.vmem [shape: f32[1,96], index: 10, kind: input, shape index: {}]   ;;  %s6504_s11 = inlined_call_operand.vmem [shape: f32[1,96], index: 11, kind: input, shape index: {}]   ;;  %s6505_s12 = inlined_call_operand.vmem [shape: f32[1,96], index: 12, kind: input, shape index: {}]   ;;  %s6506_s13 = inlined_call_operand.hbm [shape: f32[2,8,96], index: 13, kind: output, shape index: {}]  }
   0x1   :  { %20 = vsyncpa [#allocation3 + $0x1], 0  ;;  %s5059_s25 = smov 0   ;;  %s5061_s26 = smov 0  }
   0x2   :  { %s5063_s27 = smov 0   ;;  %s5065_s28 = smov 0  }
   0x3 LB: > { %6511 = sst [smem:[#allocation5_spill]] %s4966_s27  ;;  %s5080_s29 = sadd.s32 4294967295, %s4970_s28   ;;  %s4970_s28 = sphi %s5065_s28, %s6518_s28   ;;  %s4966_s27 = sphi %s5063_s27, %s6520_s27   ;;  %s4962_s26 = sphi %s5061_s26, %s6522_s26   ;;  %s4958_s25 = sphi %s5059_s25, %s6521_s25  }
   0x4   : > { %s3517_s30 = sadd.s32 4294967294, %s4970_s28   ;;  %s5084_s14 = sadd.s32 1, %s4970_s28  }
   0x5   : > { %6512 = sst [smem:[#allocation6_spill]] %s5084_s14  ;;  %s311_s15 = sadd.s32 1, %s4966_s27 }
   0x6   : > { %s308_s16 = ssub.s32 %s4970_s28, %s5084_s14  ;;  %p321_p0 = scmp.ne.s32.totalorder %s4966_s27, %s4962_s26 }
   0x7   : > { %p309_p1 = scmp.eq.s32.totalorder %s308_s16, 0  ;;  %p322_p2 = scmp.eq.s32.totalorder %s5080_s29, 1 }
   0x8   : > { %p327_p3 = scmp.ne.s32.totalorder %s4962_s26, %s4958_s25  ;;  %p328_p4 = scmp.eq.s32.totalorder %s3517_s30, 1 }
   0x9   : > { %s5095_s17 = scalar_select %p309_p1, %s4966_s27, %s311_s15  }
   0xa   : > { %p5097_p5 = por %p322_p2, %p321_p0  ;;  %p5101_p6 = por %p328_p4, %p327_p3 }
   0xb   : > { %6513 = sst [smem:[#allocation7_spill]] %s5095_s17  ;;  %p3520_p7 = scmp.ge.s32.totalorder %s4970_s28, 1 }
   0xc   : > { %s6515_s19 = scalar_select %p5101_p6, 1, 0 }
   0xd   : > { %p389_p8 = scmp.lt.s32.totalorder %s4970_s28, 3 }
   0xe   : > { %6516 = sst [smem:[#allocation8_spill]] %s6515_s19 }
   0xf   : > { %p390_p9 = pnand %p3520_p7, %p389_p8 }
  0x10   : > { %p432_p10 = scmp.lt.s32.totalorder (!%p390_p9), %s5080_s29, 1  ;;  %s4972_s15 = smov (!%p390_p9), 116  }
  0x11   : > { %393 = sbr.rel (%p390_p9) target bundleno = 2116 (0x844), region = 72  ;;  %s4973_s20 = smov (!%p390_p9), 92  }
  0x12   : > { %s4974_s21 = smov (!%p390_p9), 104   ;;  %s4975_s22 = smov (!%p390_p9), 80  }
  0x13   : > { %s4976_s23 = smov (!%p390_p9), 68   ;;  %s4977_s24 = smov (!%p390_p9), 32  }
  0x14   : > { %s4979_s17 = smov (!%p390_p9), 44   ;;  %s4981_s14 = smov (!%p390_p9), 24  }
  0x15   : > { %s4982_s19 = smov (!%p390_p9), 36  }
  0x16   : > { %v3585_v0 = vld [vmem:[%s6494_s1 + $0x78] sm:$0xf]  ;;  %v4571_v1 = vld [vmem:[%s6494_s1 + $0x80] sm:$0xf0]  ;;  %v4570_v2 = vld [vmem:[%s6494_s1 + $0x7c] sm:$0xf] }
  0x17   : > { %v3586_v3 = vor.u32 %v4571_v1, %v3585_v0  ;;  %v3587_v4 = vld [vmem:[%s6494_s1 + $0x84] sm:$0xf0]  ;;  %v3573_v5 = vld [vmem:[%s6494_s1 + $0x60] sm:$0xf]  ;;  %v4568_v6 = vld [vmem:[%s6494_s1 + $0x68] sm:$0xf0] }
  0x18   : > { %v3590_v7 = vor.u32 %v4570_v2, %v3587_v4  ;;  %v4567_v8 = vld [vmem:[%s6494_s1 + $0x64] sm:$0xf]  ;;  %v3575_v9 = vld [vmem:[%s6494_s1 + $0x6c] sm:$0xf0]  ;;  %v3574_v10 = vor.u32 %v4568_v6, %v3573_v5  ;;  %v3561_v12 = vld [vmem:[%s6494_s1 + $0x48] sm:$0xf] }
  0x19   : > { %573 = vmatpush.bf16.msra.mxu0 %v3586_v3  ;;  %v3578_v11 = vor.u32 %v4567_v8, %v3575_v9  ;;  %v4565_v13 = vld [vmem:[%s6494_s1 + $0x50] sm:$0xf0]  ;;  %v4564_v14 = vld [vmem:[%s6494_s1 + $0x4c] sm:$0xf]  ;;  %v3563_v15 = vld [vmem:[%s6494_s1 + $0x54] sm:$0xf0] }
  0x1a   : > { %586 = vmatpush.bf16.msra.mxu1 %v3590_v7  ;;  %v3562_v16 = vor.u32 %v4565_v13, %v3561_v12  ;;  %v3549_v17 = vld [vmem:[%s6494_s1 + $0x30] sm:$0xf]  ;;  %v4562_v18 = vld [vmem:[%s6494_s1 + $0x38] sm:$0xf0]  ;;  %v3566_v19 = vor.u32 %v4564_v14, %v3563_v15  ;;  %v4561_v20 = vld [vmem:[%s6494_s1 + $0x34] sm:$0xf] }
  0x1b   : > { %v3551_v21 = vld [vmem:[%s6494_s1 + $0x3c] sm:$0xf0]  ;;  %s433_s16 = scalar_select %p432_p10, %s5080_s29, 1  ;;  %v3550_v22 = vor.u32 %v4562_v18, %v3549_v17  ;;  %v3537_v24 = vld [vmem:[%s6494_s1 + $0x18] sm:$0xf]  ;;  %vm567_vm0 = vcmask 785408  }
  0x1c   : > { %v3554_v23 = vor.u32 %v4561_v20, %v3551_v21  ;;  %v4559_v25 = vld [vmem:[%s6494_s1 + $0x20] sm:$0xf0]  ;;  %v4558_v26 = vld [vmem:[%s6494_s1 + $0x1c] sm:$0xf]  ;;  %v3539_v27 = vld [vmem:[%s6494_s1 + $0x24] sm:$0xf0] }
  0x1d   : > { %574 = vmatpush.bf16.msra.mxu0 %v3574_v10  ;;  %s3522_s30 = sshll.u32 %s433_s16, 3  ;;  %v3538_v28 = vor.u32 %v4559_v25, %v3537_v24  ;;  %v3542_v29 = vor.u32 %v4558_v26, %v3539_v27  ;;  %v3525_v30 = vld [vmem:[%s6494_s1] sm:$0xf]  ;;  %v4556_v31 = vld [vmem:[%s6494_s1 + $0x8] sm:$0xf0]  ;;  %vm643_vm1 = vcmask 850944  }
  0x1e   : > { %587 = vmatpush.bf16.msra.mxu1 %v3578_v11  ;;  %s435_s27 = scalar_lea.vmem %s6493_s0, %s3522_s30  ;;  %v4555_v32 = vld [vmem:[%s6494_s1 + $0x4] sm:$0xf]  ;;  %v3527_v33 = vld [vmem:[%s6494_s1 + $0xc] sm:$0xf0]  ;;  %v3526_v34 = vor.u32 %v4556_v31, %v3525_v30  ;;  %v3593_v38 = vld [vmem:[%s6494_s1 + $0x80] sm:$0xf] }
  0x1f   : > { %v5184_v35 = vld [vmem:[%s435_s27] sm:$0xff]  ;;  %v3530_v36 = vor.u32 %v4555_v32, %v3527_v33  ;;  %v4572_v39 = vld [vmem:[%s6494_s1 + $0x88] sm:$0xf0]  ;;  %v3581_v41 = vld [vmem:[%s6494_s1 + $0x68] sm:$0xf]  ;;  %s4978_s27 = smov 56  }
  0x20   : > { %v438_v37 = vpack.c.bf16 %v5184_v35, %v5184_v35  ;;  %v3594_v40 = vor.u32 %v4572_v39, %v3593_v38  ;;  %v4569_v42 = vld [vmem:[%s6494_s1 + $0x70] sm:$0xf0]  ;;  %v3569_v44 = vld [vmem:[%s6494_s1 + $0x50] sm:$0xf]  ;;  %v4566_v45 = vld [vmem:[%s6494_s1 + $0x58] sm:$0xf0] }
  0x21   : > { %575 = vmatpush.bf16.msra.mxu0 %v3562_v16  ;;  %v3582_v43 = vor.u32 %v4569_v42, %v3581_v41  ;;  %v3570_v46 = vor.u32 %v4566_v45, %v3569_v44  ;;  %v3557_v47 = vld [vmem:[%s6494_s1 + $0x38] sm:$0xf]  ;;  %v4563_v48 = vld [vmem:[%s6494_s1 + $0x40] sm:$0xf0]  ;;  %v3545_v50 = vld [vmem:[%s6494_s1 + $0x20] sm:$0xf] }
  0x22   : > { %588 = vmatpush.bf16.msra.mxu1 %v3566_v19  ;;  %599 = vmatpush.bf16.msra.mxu2 %v3594_v40  ;;  %v3558_v49 = vor.u32 %v4563_v48, %v3557_v47  ;;  %v4560_v51 = vld [vmem:[%s6494_s1 + $0x28] sm:$0xf0]  ;;  %v3533_v53 = vld [vmem:[%s6494_s1 + $0x8] sm:$0xf]  ;;  %v4557_v54 = vld [vmem:[%s6494_s1 + $0x10] sm:$0xf0] }
  0x23   : > { %v3546_v52 = vor.u32 %v4560_v51, %v3545_v50  ;;  %v3534_v55 = vor.u32 %v4557_v54, %v3533_v53  ;;  %v5229_v56 = vld [vmem:[%s6495_s2] sm:$0x7]  ;;  %vm694_vm2 = vcmask 97280   ;;  %s4980_s16 = smov 64   ;;  %vm987_vm3 = vcmask 1043456   ;;  %s4983_s30 = smov 12  }
  0x24   : > { %v465_v57 = vperm.slane %v5229_v56, 0  ;;  %v466_v58 = vperm.slane %v5229_v56, 1  ;;  %v467_v41 = vperm.slane %v5229_v56, 2  ;;  %vm882_vm4 = vcmask 64512  }
  0x25   : > { %576 = vmatpush.bf16.msra.mxu0 %v3550_v22  ;;  %vm674_vm5 = vcmask 556032   ;;  %vm1195_vm6 = vcmask 195584   ;;  %vm1197_vm7 = vcmask 293888   ;;  %vm1199_vm8 = vcmask 392192  }
  0x26   : > { %589 = vmatpush.bf16.msra.mxu1 %v3554_v23  ;;  %600 = vmatpush.bf16.msra.mxu2 %v3582_v43  ;;  %vm1201_vm9 = vcmask 490496   ;;  %vm1203_vm10 = vcmask 588800   ;;  %vm1205_vm11 = vcmask 687104  }
  0x29   : > { %577 = vmatpush.bf16.msra.mxu0 %v3538_v28 }
  0x2a   : > { %590 = vmatpush.bf16.msra.mxu1 %v3542_v29  ;;  %601 = vmatpush.bf16.msra.mxu2 %v3570_v46 }
  0x2d   : > { %578 = vmatpush.bf16.msra.mxu0 %v3526_v34 }
  0x2e   : > { %591 = vmatpush.bf16.msra.mxu1 %v3530_v36  ;;  %602 = vmatpush.bf16.msra.mxu2 %v3558_v49 }
  0x30   : > { %3595 = vmatmul.msk.bf16.vlgmr.msra.gmra.mxu0 %vm567_vm0, %v438_v37 }
  0x31   : > { %3596 = vmatmul.msk.bf16.vlgmr.msra.gmra.mxu1 %vm567_vm0, %v438_v37 }
  0x32   : > { %603 = vmatpush.bf16.msra.mxu2 %v3546_v52 }
  0x36   : > { %604 = vmatpush.bf16.msra.mxu2 %v3534_v55 }
  0x39   : > { %3597 = vmatmul.msk.bf16.vlgmr.msra.gmra.mxu2 %vm567_vm0, %v438_v37 }
  0xad   : > { %v580_v59 = vpop.f32.mrf.mxu0 }
  0xae   : > { %v5234_v60 = vadd.f32 %v580_v59, %v465_v57  ;;  %v593_v61 = vpop.f32.mrf.mxu1 }
  0xaf   : > { %v5236_v62 = vadd.f32 %v593_v61, %v466_v58 }
  0xb0   : > { %611 = vrot.lane.b32.xlu0 %v5234_v60, %s4972_s15  ;;  %v632_v0 = vpack.c.bf16 %v5234_v60, %v5234_v60 }
  0xb1   : > { %646 = vrot.lane.b32.xlu2 %v5236_v62, %s4973_s20  ;;  %v4859_v63 = vpack.i.bf16 %v5236_v62, %v5234_v60  ;;  %v683_v43 = vpack.c.bf16 %v5236_v62, %v5236_v62 }
  0xb2   : > { %v690_v2 = vunpack.c.l.b16 %v632_v0 }
  0xb3   : > { %4860 = vrot.lane.b32.xlu1 %v4859_v63, %s4974_s21  ;;  %v980_v45 = vunpack.c.l.b16 %v683_v43  ;;  %s4986_s21 = smov 84  }
  0xb4   : > { %v691_v4 = vpack.c.b16 %v690_v2, %v690_v2 }
  0xb5   : > { %v582_v1 = vpop.f32.mrf.mxu0  ;;  %v981_v47 = vpack.c.b16 %v980_v45, %v980_v45 }
  0xb6   : > { %v595_v3 = vpop.f32.mrf.mxu1 }
  0xb8   : > { %649 = vrot.lane.b32.xlu0 %v5236_v62, %s4975_s22 }
  0xb9   : > { %652 = vrot.lane.b32.xlu2 %v5236_v62, %s4976_s23 }
  0xbb   : > { %692 = vrot.lane.b32.xlu1 %v691_v4, %s4977_s24 }
  0xbc   : > { %v606_v19 = vpop.f32.mrf.mxu2 }
  0xbd   : > { %v607_v42 = vadd.f32 %v606_v19, %v467_v41 }
  0xc0   : > { %655 = vrot.lane.b32.xlu0 %v5236_v62, %s4978_s27 }
  0xc1   : > { %658 = vrot.lane.b32.xlu2 %v5236_v62, %s4979_s17 }
  0xc4   : > { %v608_v31 = vpop.f32.mrf.mxu2 }
 0x10b   : > { %v647_v5 = vpop.permute.xlu2 %646 }
 0x10c   : > { %v662_v24 = vpack.c.bf16 %v647_v5, %v647_v5 }
 0x10e   : > { %v763_v28 = vunpack.c.l.b16 %v662_v24 }
 0x110   : > { %v764_v33 = vpack.c.b16 %v763_v28, %v763_v28 }
 0x113   : > { %v5260_v13 = vpop.permute.xlu2 %652 }
 0x114   : > { %v664_v25 = vpack.c.bf16 %v5260_v13, %v5260_v13 }
 0x116   : > { %v811_v29 = vunpack.c.l.b16 %v664_v25 }
 0x118   : > { %v812_v34 = vpack.c.b16 %v811_v29, %v811_v29 }
 0x11b   : > { %v659_v27 = vpop.permute.xlu2 %658 }
 0x11c   : > { %v666_v32 = vpack.c.bf16 %v659_v27, %v659_v27 }
 0x11e   : > { %v859_v37 = vunpack.c.l.b16 %v666_v32 }
 0x120   : > { %v860_v39 = vpack.c.b16 %v859_v37, %v859_v37 }
 0x122   : > { %v612_v6 = vpop.permute.xlu0 %611 }
 0x123   : > { %v5255_v7 = vpack.c.bf16 %v612_v6, %v612_v6 }
 0x125   : > { %v715_v8 = vunpack.c.l.b16 %v5255_v7  ;;  %v4861_v9 = vpop.permute.xlu1 %4860 }
 0x126   : > { %v4863_v10 = vunpack.i.h.bf16 %v4861_v9  ;;  %v5258_v11 = vunpack.i.l.bf16 %v4861_v9 }
 0x127   : > { %v716_v12 = vpack.c.b16 %v715_v8, %v715_v8 }
 0x128   : > { %v644_v14 = vsel %vm643_vm1, %v5258_v11, %v4863_v10  ;;  %v685_v44 = vpack.c.bf16 %v4863_v10, %v4863_v10  ;;  %v634_v51 = vpack.c.bf16 %v5258_v11, %v5258_v11 }
 0x129   : > { %717 = vrot.lane.b32.xlu1 %v716_v12, %s4977_s24  ;;  %v661_v15 = vpack.c.bf16 %v644_v14, %v644_v14 }
 0x12a   : > { %v650_v16 = vpop.permute.xlu0 %649  ;;  %v1029_v46 = vunpack.c.l.b16 %v685_v44 }
 0x12b   : > { %v663_v17 = vpack.c.bf16 %v650_v16, %v650_v16  ;;  %v739_v18 = vunpack.c.l.b16 %v661_v15 }
 0x12c   : > { %v1030_v48 = vpack.c.b16 %v1029_v46, %v1029_v46 }
 0x12d   : > { %v787_v20 = vunpack.c.l.b16 %v663_v17  ;;  %v693_v21 = vpop.permute.xlu1 %692  ;;  %v740_v22 = vpack.c.b16 %v739_v18, %v739_v18 }
 0x12e   : > { %v699_v23 = vsel %vm694_vm2, %v693_v21, 0 }
 0x12f   : > { %v5267_v26 = vpack.c.b16 %v787_v20, %v787_v20  ;;  %741 = vrot.lane.b32.xlu2 %v740_v22, %s4977_s24  ;;  %708 = vmatpush.bf16.xpose.msra.mxu3 %v699_v23 }
 0x131   : > { %789 = vrot.lane.b32.xlu0 %v5267_v26, %s4977_s24  ;;  %620 = vrot.lane.b32.xlu1 %v5234_v60, %s4975_s22  ;;  %s4987_s22 = smov 72  }
 0x132   : > { %v656_v30 = vpop.permute.xlu0 %655 }
 0x133   : > { %v665_v36 = vpack.c.bf16 %v656_v30, %v656_v30 }
 0x135   : > { %v835_v38 = vunpack.c.l.b16 %v665_v36 }
 0x136   : > { %3598 = vmatmul.msk.bf16.vlgmr.msra.gmra.mxu3 %vm694_vm2, %v632_v0 }
 0x137   : > { %617 = vrot.lane.b32.xlu2 %v5234_v60, %s4973_s20  ;;  %v836_v40 = vpack.c.b16 %v835_v38, %v835_v38  ;;  %s4985_s20 = smov 60  }
 0x139   : > { %765 = vrot.lane.b32.xlu0 %v764_v33, %s4977_s24  ;;  %813 = vrot.lane.b32.xlu1 %v812_v34, %s4977_s24 }
 0x13f   : > { %861 = vrot.lane.b32.xlu2 %v860_v39, %s4977_s24 }
 0x141   : > { %623 = vrot.lane.b32.xlu0 %v5234_v60, %s4976_s23  ;;  %837 = vrot.lane.b32.xlu1 %v836_v40, %s4977_s24 }
 0x147   : > { %667 = vrot.lane.b32.xlu2 %v5236_v62, %s4972_s15  ;;  %s4984_s15 = smov 48  }
 0x149   : > { %626 = vrot.lane.b32.xlu0 %v5234_v60, %s4978_s27  ;;  %629 = vrot.lane.b32.xlu1 %v5234_v60, %s4979_s17 }
 0x14f   : > { %680 = vrot.lane.b32.xlu2 %v607_v42, %s4979_s17 }
 0x151   : > { %672 = vrot.lane.b32.xlu0 %v607_v42, %s4976_s23  ;;  %677 = vrot.lane.b32.xlu1 %v607_v42, %s4978_s27 }
 0x157   : > { %982 = vrot.lane.b32.xlu2 %v981_v47, %s4980_s16 }
 0x159   : > { %1031 = vrot.lane.b32.xlu0 %v1030_v48, %s4980_s16 }
 0x189   : > { %v742_v49 = vpop.permute.xlu2 %741 }
 0x18a   : > { %v747_v50 = vsel %vm694_vm2, %v742_v49, 0 }
 0x18b   : > { %756 = vmatpush.bf16.xpose.msrb.mxu0 %v747_v50 }
 0x191   : > { %v618_v52 = vpop.permute.xlu2 %617 }
 0x192   : > { %3600 = vmatmul.msk.bf16.vlgmr.msrb.gmra.mxu0 %vm694_vm2, %v634_v51  ;;  %v635_v6 = vpack.c.bf16 %v618_v52, %v618_v52 }
 0x199   : > { %v862_v53 = vpop.permute.xlu2 %861 }
 0x19a   : > { %v867_v4 = vsel %vm694_vm2, %v862_v53, 0 }
 0x19b   : > { %v718_v54 = vpop.permute.xlu1 %717 }
 0x19c   : > { %v723_v55 = vsel %vm694_vm2, %v718_v54, 0 }
 0x19d   : > { %732 = vmatpush.bf16.xpose.msrb.mxu3 %v723_v55 }
 0x1a1   : > { %v668_v56 = vpop.permute.xlu2 %667 }
 0x1a2   : > { %v684_v57 = vpack.c.bf16 %v668_v56, %v668_v56 }
 0x1a3   : > { %v790_v58 = vpop.permute.xlu0 %789  ;;  %v621_v59 = vpop.permute.xlu1 %620 }
 0x1a4   : > { %v1005_v60 = vunpack.c.l.b16 %v684_v57  ;;  %v795_v61 = vsel %vm694_vm2, %v790_v58, 0  ;;  %3599 = vmatmul.msk.bf16.vlgmr.msrb.gmra.mxu3 %vm694_vm2, %v5255_v7  ;;  %v636_v7 = vpack.c.bf16 %v621_v59, %v621_v59 }
 0x1a5   : > { %804 = vmatpush.bf16.xpose.msra.mxu3 %v795_v61 }
 0x1a6   : > { %v1006_v62 = vpack.c.b16 %v1005_v60, %v1005_v60 }
 0x1a8   : > { %1007 = vrot.lane.b32.xlu1 %v1006_v62, %s4980_s16 }
 0x1a9   : > { %v5306_v63 = vpop.permute.xlu2 %680 }
 0x1ab   : > { %v766_v0 = vpop.permute.xlu0 %765  ;;  %v814_v1 = vpop.permute.xlu1 %813 }
 0x1ac   : > { %v819_v2 = vsel %vm694_vm2, %v814_v1, 0  ;;  %v771_v3 = vsel %vm694_vm2, %v766_v0, 0 }
 0x1ad   : > { %780 = vmatpush.bf16.xpose.msrb.mxu1 %v771_v3  ;;  %828 = vmatpush.bf16.xpose.msrb.mxu3 %v819_v2 }
 0x1b0   : > { %1052 = vrot.lane.b32.xlu1 %v764_v33, %s4980_s16 }
 0x1b1   : > { %v983_v5 = vpop.permute.xlu2 %982 }
 0x1b2   : > { %v989_v8 = vsel %vm987_vm3, %v983_v5, 0 }
 0x1b3   : > { %998 = vmatpush.bf16.msrb.mxu2 %v989_v8  ;;  %v624_v9 = vpop.permute.xlu0 %623  ;;  %v838_v10 = vpop.permute.xlu1 %837 }
 0x1b4   : > { %v843_v11 = vsel %vm694_vm2, %v838_v10, 0  ;;  %3601 = vmatmul.msk.bf16.vlgmr.msrb.gmra.mxu1 %vm694_vm2, %v635_v6  ;;  %3602 = vmatmul.msk.bf16.vlgmr.msra.gmra.mxu3 %vm694_vm2, %v636_v7  ;;  %v637_v19 = vpack.c.bf16 %v624_v9, %v624_v9 }
 0x1b5   : > { %876 = vmatpush.bf16.xpose.msra.mxu1 %v867_v4  ;;  %852 = vmatpush.bf16.xpose.msra.mxu0 %v843_v11 }
 0x1b9   : > { %v710_v12 = vpop.f32.mrf.mxu3 }
 0x1ba   : > { %v883_v14 = vsel %vm882_vm4, %v710_v12, -inf }
 0x1bb   : > { %884 = vmax.xlane.f32.xlu2 %v883_v14  ;;  %v627_v15 = vpop.permute.xlu0 %626  ;;  %v630_v17 = vpop.permute.xlu1 %629 }
 0x1bc   : > { %v638_v16 = vpack.c.bf16 %v627_v15, %v627_v15  ;;  %v639_v20 = vpack.c.bf16 %v630_v17, %v630_v17 }
 0x1be   : > { %3604 = vmatmul.msk.bf16.vlgmr.msra.gmra.mxu0 %vm694_vm2, %v638_v16 }
 0x1c1   : > { %v712_v18 = vpop.f32.mrf.mxu3 }
 0x1c3   : > { %v673_v21 = vpop.permute.xlu0 %672  ;;  %v5322_v27 = vpop.permute.xlu1 %677 }
 0x1c4   : > { %3603 = vmatmul.msk.bf16.vlgmr.msrb.gmra.mxu3 %vm694_vm2, %v637_v19  ;;  %3605 = vmatmul.msk.bf16.vlgmr.msra.gmra.mxu1 %vm694_vm2, %v639_v20  ;;  %v675_v53 = vsel %vm674_vm5, %v5260_v13, %v673_v21 }
 0x1c5   : > { %v686_v55 = vpack.c.bf16 %v675_v53, %v675_v53 }
 0x1c7   : > { %v1095_v58 = vunpack.c.l.b16 %v686_v55 }
 0x1c9   : > { %v1096_v60 = vpack.c.b16 %v1095_v58, %v1095_v58 }
 0x1cb   : > { %v1032_v22 = vpop.permute.xlu0 %1031 }
 0x1cc   : > { %v1037_v23 = vsel %vm987_vm3, %v1032_v22, 0 }
 0x1cd   : > { %1046 = vmatpush.bf16.msrb.mxu0 %v1037_v23 }
 0x20f   : > { %v758_v24 = vpop.f32.mrf.mxu0 }
 0x210   : > { %v889_v25 = vsel %vm882_vm4, %v758_v24, -inf }
 0x211   : > { %890 = vmax.xlane.f32.xlu1 %v889_v25 }
 0x217   : > { %v760_v28 = vpop.f32.mrf.mxu0 }
 0x21a   : > { %v1008_v29 = vpop.permute.xlu1 %1007 }
 0x21b   : > { %v1013_v30 = vsel %vm987_vm3, %v1008_v29, 0 }
 0x21c   : > { %1022 = vmatpush.bf16.msra.mxu3 %v1013_v30 }
 0x222   : > { %v1053_v31 = vpop.permute.xlu1 %1052 }
 0x223   : > { %v1058_v32 = vsel %vm987_vm3, %v1053_v31, 0 }
 0x224   : > { %1067 = vmatpush.bf16.msrb.mxu1 %v1058_v32 }
 0x227   : > { %v734_v33 = vpop.f32.mrf.mxu3 }
 0x228   : > { %v886_v34 = vsel %vm882_vm4, %v734_v33, -inf }
 0x229   : > { %887 = vmax.xlane.f32.xlu0 %v886_v34 }
 0x22e   : > { %v885_v36 = vpop.xlane.xlu2 %884 }
 0x22f   : > { %v907_v37 = vsub.f32 %v710_v12, %v885_v36  ;;  %v736_v38 = vpop.f32.mrf.mxu3 }
 0x231   : > { %v915_v39 = vmul.f32 1.442695, %v907_v37  ;;  %v782_v40 = vpop.f32.mrf.mxu1 }
 0x232   : > { %v892_v41 = vsel %vm882_vm4, %v782_v40, -inf }
 0x233   : > { %4870 = vpow2.f32 %v915_v39  ;;  %893 = vmax.xlane.f32.xlu2 %v892_v41  ;;  %v687_v41 = vpack.c.bf16 %v5322_v27, %v5322_v27 }
 0x237   : > { %v5328_v42 = vpop.f32.mrf.mxu3 }
 0x238   : > { %v895_v52 = vsel %vm882_vm4, %v5328_v42, -inf }
 0x239   : > { %v4871_v43 = vpop.eup %4870  ;;  %v784_v44 = vpop.f32.mrf.mxu1 }
 0x23a   : > { %v931_v45 = vsel %vm882_vm4, %v4871_v43, 0.0 }
 0x23b   : > { %932 = vadd.xlane.f32.xlu2 %v931_v45  ;;  %v854_v46 = vpop.f32.mrf.mxu0 }
 0x23c   : > { %v901_v47 = vsel %vm882_vm4, %v854_v46, -inf }
 0x23d   : > { %902 = vmax.xlane.f32.xlu0 %v901_v47 }
 0x23f   : > { %v808_v48 = vpop.f32.mrf.mxu3 }
 0x241   : > { %v5332_v49 = vpop.f32.mrf.mxu1 }
 0x242   : > { %v904_v50 = vsel %vm882_vm4, %v5332_v49, -inf }
 0x243   : > { %v856_v51 = vpop.f32.mrf.mxu0  ;;  %905 = vmax.xlane.f32.xlu1 %v904_v50 }
 0x245   : > { %896 = vmax.xlane.f32.xlu0 %v895_v52 }
 0x247   : > { %v830_v54 = vpop.f32.mrf.mxu3 }
 0x248   : > { %v898_v57 = vsel %vm882_vm4, %v830_v54, -inf }
 0x249   : > { %v880_v56 = vpop.f32.mrf.mxu1 }
 0x24b   : > { %899 = vmax.xlane.f32.xlu1 %v898_v57 }
 0x24f   : > { %v832_v59 = vpop.f32.mrf.mxu3 }
 0x253   : > { %1097 = vrot.lane.b32.xlu2 %v1096_v60, %s4980_s16 }
 0x284   : > { %v891_v61 = vpop.xlane.xlu1 %890 }
 0x285   : > { %v909_v62 = vsub.f32 %v758_v24, %v891_v61 }
 0x287   : > { %v919_v0 = vmul.f32 1.442695, %v909_v62 }
 0x289   : > { %4872 = vpow2.f32 %v919_v0 }
 0x28f   : > { %v5341_v1 = vpop.eup %4872 }
 0x290   : > { %v937_v13 = vsel %vm882_vm4, %v5341_v1, 0.0 }
 0x291   : > { %938 = vadd.xlane.f32.xlu1 %v937_v13 }
 0x29c   : > { %v888_v2 = vpop.xlane.xlu0 %887 }
 0x29d   : > { %v908_v5 = vsub.f32 %v734_v33, %v888_v2 }
 0x29f   : > { %v917_v7 = vmul.f32 1.442695, %v908_v5 }
 0x2a6   : > { %v894_v3 = vpop.xlane.xlu2 %893 }
 0x2a7   : > { %v910_v4 = vsub.f32 %v782_v40, %v894_v3 }
 0x2a9   : > { %v921_v6 = vmul.f32 1.442695, %v910_v4 }
 0x2aa   : > { %1073 = vrot.lane.b32.xlu1 %v5267_v26, %s4980_s16 }
 0x2ab   : > { %4874 = vpow2.f32 %v921_v6 }
 0x2ae   : > { %v933_v8 = vpop.xlane.xlu2 %932 }
 0x2af   : > { %4876 = vrcp.f32 %v933_v8 }
 0x2b0   : > { %v903_v9 = vpop.xlane.xlu0 %902  ;;  %4878 = vpow2.f32 %v917_v7 }
 0x2b1   : > { %v4875_v10 = vpop.eup %4874  ;;  %v913_v11 = vsub.f32 %v854_v46, %v903_v9 }
 0x2b2   : > { %v940_v12 = vsel %vm882_vm4, %v4875_v10, 0.0 }
 0x2b3   : > { %941 = vadd.xlane.f32.xlu0 %v940_v12  ;;  %v927_v15 = vmul.f32 1.442695, %v913_v11 }
 0x2b5   : > { %v4877_v14 = vpop.eup %4876  ;;  %4880 = vpow2.f32 %v927_v15 }
 0x2b6   : > { %v963_v16 = vmul.f32 %v4877_v14, %v4871_v43  ;;  %v1098_v17 = vpop.permute.xlu2 %1097  ;;  %v906_v18 = vpop.xlane.xlu1 %905  ;;  %v1119_v43 = vunpack.c.l.b16 %v687_v41 }
 0x2b7   : > { %v4879_v19 = vpop.eup %4878  ;;  %v1103_v20 = vsel %vm987_vm3, %v1098_v17, 0  ;;  %v914_v31 = vsub.f32 %v5332_v49, %v906_v18 }
 0x2b8   : > { %v897_v26 = vpop.xlane.xlu0 %896  ;;  %1112 = vmatpush.bf16.msrb.mxu3 %v1103_v20  ;;  %v971_v21 = vpack.c.bf16 %v963_v16, %v963_v16  ;;  %v934_v23 = vsel %vm882_vm4, %v4879_v19, 0.0  ;;  %v1120_v45 = vpack.c.b16 %v1119_v43, %v1119_v43 }
 0x2b9   : > { %v911_v22 = vsub.f32 %v5328_v42, %v897_v26  ;;  %v929_v33 = vmul.f32 1.442695, %v914_v31  ;;  %v688_v42 = vpack.c.bf16 %v5306_v63, %v5306_v63 }
 0x2ba   : > { %3606 = vmatmul.msk.bf16.vlgmr.msrb.gmra.mxu2 %vm882_vm4, %v971_v21 }
 0x2bb   : > { %935 = vadd.xlane.f32.xlu0 %v934_v23  ;;  %v923_v24 = vmul.f32 1.442695, %v911_v22  ;;  %v5352_v28 = vpop.eup %4880  ;;  %v1143_v44 = vunpack.c.l.b16 %v688_v42 }
 0x2bc   : > { %v949_v32 = vsel %vm882_vm4, %v5352_v28, 0.0 }
 0x2bd   : > { %4882 = vpow2.f32 %v923_v24  ;;  %v1144_v46 = vpack.c.b16 %v1143_v44, %v1143_v44 }
 0x2be   : > { %v900_v25 = vpop.xlane.xlu1 %899 }
 0x2bf   : > { %v912_v29 = vsub.f32 %v830_v54, %v900_v25 }
 0x2c1   : > { %v925_v30 = vmul.f32 1.442695, %v912_v29 }
 0x2c3   : > { %4884 = vpow2.f32 %v925_v30  ;;  %950 = vadd.xlane.f32.xlu0 %v949_v32  ;;  %v4883_v34 = vpop.eup %4882 }
 0x2c4   : > { %4886 = vpow2.f32 %v929_v33  ;;  %v943_v37 = vsel %vm882_vm4, %v4883_v34, 0.0  ;;  %v4578_v33 = vld [vmem:[%s6496_s3 + $0x28] sm:$0xff] }
 0x2c9   : > { %v4885_v36 = vpop.eup %4884 }
 0x2ca   : > { %v946_v38 = vsel %vm882_vm4, %v4885_v36, 0.0  ;;  %v4887_v39 = vpop.eup %4886 }
 0x2cb   : > { %944 = vadd.xlane.f32.xlu0 %v943_v37  ;;  %947 = vadd.xlane.f32.xlu2 %v946_v38  ;;  %v952_v40 = vsel %vm882_vm4, %v4887_v39, 0.0  ;;  %v4575_v37 = vld [vmem:[%s6496_s3 + $0x10] sm:$0xff]  ;;  %v4574_v38 = vld [vmem:[%s6496_s3 + $0x8] sm:$0xff] }
 0x2d4   : > { %953 = vadd.xlane.f32.xlu1 %v952_v40 }
 0x2df   : > { %1121 = vrot.lane.b32.xlu0 %v1120_v45, %s4980_s16 }
 0x2e3   : > { %1145 = vrot.lane.b32.xlu2 %v1144_v46, %s4980_s16  ;;  %s429_s16 = sand.u32 1, %s4962_s26  }
 0x304   : > { %v939_v47 = vpop.xlane.xlu1 %938 }
 0x305   : > { %4888 = vrcp.f32 %v939_v47 }
 0x30b   : > { %v4889_v48 = vpop.eup %4888 }
 0x30c   : > { %v965_v49 = vmul.f32 %v4889_v48, %v5341_v1 }
 0x30e   : > { %v973_v50 = vpack.c.bf16 %v965_v49, %v965_v49 }
 0x310   : > { %3608 = vmatmul.msk.bf16.vlgmr.msrb.gmra.mxu0 %vm882_vm4, %v973_v50 }
 0x31c   : > { %v1074_v27 = vpop.permute.xlu1 %1073 }
 0x31d   : > { %v1079_v51 = vsel %vm987_vm3, %v1074_v27, 0 }
 0x31e   : > { %1088 = vmatpush.bf16.msra.mxu2 %v1079_v51 }
 0x322   : > { %1265 = vmatpush.bf16.msrb.mxu2 %v4578_v33  ;;  %v4635_v33 = vld [vmem:[%s6500_s7 + $0x1bc] sm:$0xf0] }
 0x326   : > { %v942_v63 = vpop.xlane.xlu0 %941 }
 0x327   : > { %4890 = vrcp.f32 %v942_v63 }
 0x32d   : > { %v4891_v52 = vpop.eup %4890 }
 0x32e   : > { %v966_v53 = vmul.f32 %v4891_v52, %v4875_v10  ;;  %v936_v54 = vpop.xlane.xlu0 %935 }
 0x32f   : > { %4892 = vrcp.f32 %v936_v54 }
 0x330   : > { %v974_v55 = vpack.c.bf16 %v966_v53, %v966_v53  ;;  %v4864_v53 = vld [vmem:[%s6497_s4] ss:$0 sm:$0xff] }
 0x332   : > { %3609 = vmatmul.msk.bf16.vlgmr.msrb.gmra.mxu1 %vm882_vm4, %v974_v55 }
 0x335   : > { %v4893_v56 = vpop.eup %4892 }
 0x336   : > { %v964_v57 = vmul.f32 %v4893_v56, %v4879_v19  ;;  %v951_v58 = vpop.xlane.xlu0 %950 }
 0x338   : > { %v972_v59 = vpack.c.bf16 %v964_v57, %v964_v57 }
 0x33a   : > { %3607 = vmatmul.msk.bf16.vlgmr.msra.gmra.mxu3 %vm882_vm4, %v972_v59  ;;  %v4988_v59 = vmov 96.0  }
 0x33d   : > { %v5371_v60 = vpop.f32.mrf.mxu2 }
 0x33e   : > { %v945_v61 = vpop.xlane.xlu0 %944  ;;  %v948_v62 = vpop.xlane.xlu2 %947 }
 0x33f   : > { %4894 = vrcp.f32 %v945_v61  ;;  %v4667_v61 = vld [vmem:[%s6500_s7 + $0x2bc] sm:$0xf0] }
 0x340   : > { %4896 = vrcp.f32 %v948_v62  ;;  %v4659_v62 = vld [vmem:[%s6500_s7 + $0x284] sm:$0xf] }
 0x341   : > { %4898 = vrcp.f32 %v951_v58 }
 0x345   : > { %v4895_v0 = vpop.eup %4894  ;;  %v1002_v1 = vpop.f32.mrf.mxu2 }
 0x346   : > { %v4897_v13 = vpop.eup %4896  ;;  %v967_v2 = vmul.f32 %v4895_v0, %v4883_v34  ;;  %v1146_v3 = vpop.permute.xlu2 %1145  ;;  %v4577_v34 = vld [vmem:[%s6496_s3 + $0x20] sm:$0xff]  ;;  %v3969_v1 = vld [vmem:[%s6500_s7 + $0x288] sm:$0xf] }
 0x347   : > { %v968_v4 = vmul.f32 %v4897_v13, %v4885_v36  ;;  %v1151_v5 = vsel %vm987_vm3, %v1146_v3, 0  ;;  %v954_v6 = vpop.xlane.xlu1 %953  ;;  %v4899_v9 = vpop.eup %4898  ;;  %1266 = vmatpush.bf16.msrb.mxu2 %v4577_v34  ;;  %v4576_v36 = vld [vmem:[%s6496_s3 + $0x18] sm:$0xff]  ;;  %v4668_v13 = vld [vmem:[%s6500_s7 + $0x2c4] sm:$0xf0]  ;;  %v4627_v34 = vld [vmem:[%s6500_s7 + $0x184] sm:$0xf] }
 0x348   : > { %v975_v7 = vpack.c.bf16 %v967_v2, %v967_v2  ;;  %4900 = vrcp.f32 %v954_v6  ;;  %1160 = vmatpush.bf16.msra.mxu1 %v1151_v5  ;;  %v969_v12 = vmul.f32 %v4899_v9, %v5352_v28  ;;  %v3970_v3 = vor.u32 %v4668_v13, %v3969_v1  ;;  %v3971_v5 = vld [vmem:[%s6500_s7 + $0x2c8] sm:$0xf0]  ;;  %v3897_v6 = vld [vmem:[%s6500_s7 + $0x200] sm:$0xf] }
 0x349   : > { %v976_v8 = vpack.c.bf16 %v968_v4, %v968_v4  ;;  %4902 = vrcp.f32 %v4988_v59  ;;  %v4660_v4 = vld [vmem:[%s6500_s7 + $0x28c] sm:$0xf]  ;;  %v4651_v9 = vld [vmem:[%s6500_s7 + $0x23c] sm:$0xf0]  ;;  %v3707_v59 = vld [vmem:[%s6500_s7 + $0xc0] sm:$0xf0] }
 0x34a   : > { %3610 = vmatmul.msk.bf16.vlgmr.msra.gmra.mxu2 %vm882_vm4, %v975_v7  ;;  %v977_v17 = vpack.c.bf16 %v969_v12, %v969_v12  ;;  %v3898_v12 = vor.u32 %v4651_v9, %v3897_v6  ;;  %v3715_v1 = vld [vmem:[%s6500_s7 + $0xc8] sm:$0xf0]  ;;  %v3643_v6 = vld [vmem:[%s6500_s7 + $0x40] sm:$0xf0] }
 0x34b   : > { %3611 = vmatmul.msk.bf16.vlgmr.msrb.gmra.mxu3 %vm882_vm4, %v976_v8  ;;  %1267 = vmatpush.bf16.msrb.mxu2 %v4576_v36  ;;  %v3974_v8 = vor.u32 %v4660_v4, %v3971_v5  ;;  %v4579_v4 = vld [vmem:[%s6500_s7 + $0x4] sm:$0xf] }
 0x34c   : > { %1960 = vmatpush.bf16.msrb.mxu1 %v3970_v3  ;;  %v4587_v3 = vld [vmem:[%s6500_s7 + $0x3c] sm:$0xf0]  ;;  %v3646_v9 = vor.u32 %v4579_v4, %v3643_v6  ;;  %v3723_v4 = vld [vmem:[%s6500_s7 + $0xd0] sm:$0xf0]  ;;  %v4606_v6 = vld [vmem:[%s6500_s7 + $0xd4] sm:$0xf0] }
 0x34e   : > { %v4901_v10 = vpop.eup %4900 }
 0x34f   : > { %v970_v11 = vmul.f32 %v4901_v10, %v4887_v39  ;;  %1268 = vmatpush.bf16.msrb.mxu2 %v4575_v37  ;;  %v4573_v39 = vld [vmem:[%s6496_s3] sm:$0xff]  ;;  %v4903_v7 = vpop.eup %4902 }
 0x350   : > { %v4643_v10 = vld [vmem:[%s6500_s7 + $0x204] sm:$0xf]  ;;  %vm1287_vm12 = vweird.f32 %v4903_v7 }
 0x351   : > { %v978_v14 = vpack.c.bf16 %v970_v11, %v970_v11  ;;  %v1122_v15 = vpop.permute.xlu0 %1121  ;;  %v3899_v11 = vld [vmem:[%s6500_s7 + $0x240] sm:$0xf0] }
 0x352   : > { %v1127_v16 = vsel %vm987_vm3, %v1122_v15, 0  ;;  %v3905_v15 = vld [vmem:[%s6500_s7 + $0x208] sm:$0xf]  ;;  %v3835_v37 = vld [vmem:[%s6500_s7 + $0x1c0] sm:$0xf0] }
 0x353   : > { %3613 = vmatmul.msk.bf16.vlgmr.msra.gmra.mxu1 %vm882_vm4, %v978_v14  ;;  %1136 = vmatpush.bf16.msra.mxu0 %v1127_v16  ;;  %v3902_v14 = vor.u32 %v4643_v10, %v3899_v11  ;;  %v4652_v16 = vld [vmem:[%s6500_s7 + $0x244] sm:$0xf0]  ;;  %v4580_v11 = vld [vmem:[%s6500_s7 + $0xc] sm:$0xf] }
 0x354   : > { %1269 = vmatpush.bf16.msrb.mxu2 %v4574_v38  ;;  %v3841_v38 = vld [vmem:[%s6500_s7 + $0x188] sm:$0xf] }
 0x356   : > { %3612 = vmatmul.msk.bf16.vlgmr.msra.gmra.mxu0 %vm882_vm4, %v977_v17  ;;  %v4644_v17 = vld [vmem:[%s6500_s7 + $0x20c] sm:$0xf] }
 0x358   : > { %1270 = vmatpush.bf16.msrb.mxu2 %v4573_v39  ;;  %v4636_v39 = vld [vmem:[%s6500_s7 + $0x1c4] sm:$0xf0] }
 0x35c   : > { %1973 = vmatpush.bf16.msra.mxu2 %v3974_v8  ;;  %v4588_v8 = vld [vmem:[%s6500_s7 + $0x44] sm:$0xf0] }
 0x38d   : > { %v1048_v18 = vpop.f32.mrf.mxu0 }
 0x38e   : > { %1171 = vrot.lane.b32.xlu2 %v1048_v18, %s4981_s14  ;;  %v3906_v18 = vor.u32 %v4652_v16, %v3905_v15  ;;  %v4669_v16 = vld [vmem:[%s6500_s7 + $0x2cc] sm:$0xf0]  ;;  %s3521_s14 = sshll.u32 %s429_s16, 3 }
 0x38f   : > { %s431_s27 = scalar_lea.vmem [#allocation2], %s3521_s14  ;;  %s4928_s14 = scalar_lea.hbm %s6506_s13, 16 }
 0x390   : > { %1961 = vmatpush.bf16.msrb.mxu1 %v3906_v18  ;;  %v3979_v18 = vld [vmem:[%s6500_s7 + $0x2d0] sm:$0xf0] }
 0x395   : > { %v1050_v19 = vpop.f32.mrf.mxu0 }
 0x396   : > { %v3907_v19 = vld [vmem:[%s6500_s7 + $0x248] sm:$0xf0] }
 0x3af   : > { %v1069_v20 = vpop.f32.mrf.mxu1 }
 0x3b0   : > { %1175 = vrot.lane.b32.xlu0 %v1069_v20, %s4982_s19  ;;  %v1283_v20 = vmul.f32 96.0, %v4903_v7  ;;  %s4552_s19 = sshll.u32 %s5080_s29, 3  ;;  %s3455_s29 = sshll.u32 %s431_s27, 4  ;;  %s3456_s29 = int_to_ptr.vmem [resolvable:$true] %s3455_s29 }
 0x3b7   : > { %v1071_v26 = vpop.f32.mrf.mxu1 }
 0x3b8   : > { %v3910_v26 = vor.u32 %v4644_v17, %v3907_v19  ;;  %v4661_v17 = vld [vmem:[%s6500_s7 + $0x294] sm:$0xf] }
 0x3ba   : > { %1974 = vmatpush.bf16.msra.mxu2 %v3910_v26  ;;  %v3985_v26 = vld [vmem:[%s6500_s7 + $0x298] sm:$0xf] }
 0x3bd   : > { %v1024_v21 = vpop.f32.mrf.mxu3 }
 0x3be   : > { %1167 = vrot.lane.b32.xlu1 %v1024_v21, %s4983_s30  ;;  %v1284_v21 = vsub.f32 1.0, %v1283_v20  ;;  %v3982_v20 = vor.u32 %v4661_v17, %v3979_v18  ;;  %s3443_s30 = scalar_lea.sflag [#allocation3], %s429_s16 }
 0x3c5   : > { %v1026_v22 = vpop.f32.mrf.mxu3 }
 0x3c6   : > { %v1285_v22 = vmul.f32 %v4903_v7, %v1284_v21  ;;  %v4670_v21 = vld [vmem:[%s6500_s7 + $0x2d4] sm:$0xf0] }
 0x3cd   : > { %v1090_v23 = vpop.f32.mrf.mxu2 }
 0x3ce   : > { %v1114_v24 = vpop.f32.mrf.mxu3  ;;  %1179 = vrot.lane.b32.xlu2 %v1090_v23, %s4984_s15  ;;  %v1286_v23 = vadd.f32 %v4903_v7, %v1285_v22  ;;  %v4662_v22 = vld [vmem:[%s6500_s7 + $0x29c] sm:$0xf] }
 0x3cf   : > { %1183 = vrot.lane.b32.xlu0 %v1114_v24, %s4985_s20 }
 0x3d0   : > { %v1162_v25 = vpop.f32.mrf.mxu1  ;;  %v5454_v24 = vsel %vm1287_vm12, %v4903_v7, %v1286_v23  ;;  %v3649_v7 = vld [vmem:[%s6500_s7 + $0x8] sm:$0xf]  ;;  %v3986_v23 = vor.u32 %v4670_v21, %v3985_v26  ;;  %v4590_v26 = vld [vmem:[%s6500_s7 + $0x54] sm:$0xf0] }
 0x3d1   : > { %1191 = vrot.lane.b32.xlu1 %v1162_v25, %s4986_s21  ;;  %v3650_v10 = vor.u32 %v4588_v8, %v3649_v7 }
 0x3d3   : > { %v1138_v28 = vpop.f32.mrf.mxu0 }
 0x3d5   : > { %v1092_v29 = vpop.f32.mrf.mxu2 }
 0x3d6   : > { %v1116_v30 = vpop.f32.mrf.mxu3  ;;  %1187 = vrot.lane.b32.xlu2 %v1138_v28, %s4987_s22  ;;  %s3453_s22 = scalar_lea.hbm %s6506_s13, %s4552_s19 }
 0x3d7   : > { %s3457_s17 = sshll.u32 %s3453_s22, 4  ;;  %s3458_s17 = int_to_ptr.hbm [resolvable:$true] %s3457_s17 }
 0x3d8   : > { %v1164_v31 = vpop.f32.mrf.mxu1  ;;  %s4922_s15 = sshra.s32 %s3458_s17, 4  ;;  %s4923_s15 = int_to_ptr.hbm [resolvable:$true] %s4922_s15 }
 0x3d9   : > { %s4924_s19 = scalar_lea.hbm %s4923_s15, 8  ;;  %p4929_p0 = scmp.lt.s32.totalorder %s4923_s15, %s6506_s13 }
 0x3da   : > { %p4925_p11 = scmp.ne.s32.totalorder %s4923_s15, %s4924_s19  ;;  %p4930_p1 = scmp.lt.s32.totalorder %s4928_s14, %s4924_s19 }
 0x3db   : > { %v1140_v32 = vpop.f32.mrf.mxu0 }
 0x3dc   : > { %v3833_v32 = vld [vmem:[%s6500_s7 + $0x180] sm:$0xf]  ;;  %p4926_p12 = pnand %p4925_p11, %p5097_p5  ;;  %p4931_p2 = por %p4930_p1, %p4929_p0 }
 0x3dd   : > { %v3834_v36 = vor.u32 %v4635_v33, %v3833_v32  ;;  %v4645_v33 = vld [vmem:[%s6500_s7 + $0x214] sm:$0xf] }
 0x3de   : > { %p4927_p13 = pneg %p4926_p12 }
 0x3e0   : > { %p4932_p3 = pnand %p4931_p2, %p4927_p13 }
 0x3e8   : > { %v1172_v40 = vpop.permute.xlu2 %1171 }
 0x422   : > { %v1176_v44 = vpop.permute.xlu0 %1175 }
 0x428   : > { %v1180_v42 = vpop.permute.xlu2 %1179 }
 0x430   : > { %v1168_v41 = vpop.permute.xlu1 %1167  ;;  %v1188_v49 = vpop.permute.xlu2 %1187 }
 0x431   : > { %v1194_v43 = vsel %vm694_vm2, %v5371_v60, %v1168_v41  ;;  %v3961_v60 = vld [vmem:[%s6500_s7 + $0x280] sm:$0xf]  ;;  %v3842_v41 = vor.u32 %v4636_v39, %v3841_v38  ;;  %v4654_v38 = vld [vmem:[%s6500_s7 + $0x254] sm:$0xf0]  ;;  %v4646_v39 = vld [vmem:[%s6500_s7 + $0x21c] sm:$0xf] }
 0x432   : > { %v1196_v45 = vsel %vm1195_vm6, %v1194_v43, %v1172_v40  ;;  %v3962_v0 = vor.u32 %v4667_v61, %v3961_v60  ;;  %v3838_v40 = vor.u32 %v4627_v34, %v3835_v37  ;;  %v3843_v43 = vld [vmem:[%s6500_s7 + $0x1c8] sm:$0xf0]  ;;  %v3713_v60 = vld [vmem:[%s6500_s7 + $0x88] sm:$0xf]  ;;  %v3915_v34 = vld [vmem:[%s6500_s7 + $0x250] sm:$0xf0] }
 0x433   : > { %v1198_v46 = vsel %vm1197_vm7, %v1196_v45, %v1176_v44  ;;  %1962 = vmatpush.bf16.msrb.mxu1 %v3842_v41  ;;  %v3769_v45 = vld [vmem:[%s6500_s7 + $0x100] sm:$0xf]  ;;  %v4604_v61 = vld [vmem:[%s6500_s7 + $0xc4] sm:$0xf0]  ;;  %v3918_v37 = vor.u32 %v4645_v33, %v3915_v34 }
 0x434   : > { %v1200_v48 = vsel %vm1199_vm8, %v1198_v46, %v1180_v42  ;;  %1934 = vmatpush.bf16.msra.mxu3 %v3962_v0  ;;  %v4628_v42 = vld [vmem:[%s6500_s7 + $0x18c] sm:$0xf]  ;;  %v4619_v46 = vld [vmem:[%s6500_s7 + $0x13c] sm:$0xf0]  ;;  %v3714_v0 = vor.u32 %v4604_v61, %v3713_v60 }
 0x435   : > { %v3846_v44 = vor.u32 %v4628_v42, %v3843_v43  ;;  %v3849_v43 = vld [vmem:[%s6500_s7 + $0x190] sm:$0xf] }
 0x437   : > { %1975 = vmatpush.bf16.msra.mxu2 %v3846_v44  ;;  %v4637_v44 = vld [vmem:[%s6500_s7 + $0x1cc] sm:$0xf0] }
 0x438   : > { %1935 = vmatpush.bf16.msra.mxu3 %v3898_v12  ;;  %v3651_v12 = vld [vmem:[%s6500_s7 + $0x48] sm:$0xf0] }
 0x439   : > { %v3654_v15 = vor.u32 %v4580_v11, %v3651_v12 }
 0x43c   : > { %1936 = vmatpush.bf16.msra.mxu3 %v3834_v36  ;;  %v3921_v36 = vld [vmem:[%s6500_s7 + $0x218] sm:$0xf] }
 0x43d   : > { %v3922_v41 = vor.u32 %v4654_v38, %v3921_v36  ;;  %v4865_v38 = vld [vmem:[%s6498_s5] ss:$0 sm:$0xff] }
 0x441   : > { %v1184_v47 = vpop.permute.xlu0 %1183 }
 0x442   : > { %v1202_v50 = vsel %vm1201_vm9, %v1200_v48, %v1184_v47  ;;  %v4611_v47 = vld [vmem:[%s6500_s7 + $0x104] sm:$0xf]  ;;  %v3770_v48 = vor.u32 %v4619_v46, %v3769_v45  ;;  %v4629_v45 = vld [vmem:[%s6500_s7 + $0x194] sm:$0xf]  ;;  %v3850_v46 = vor.u32 %v4637_v44, %v3849_v43  ;;  %v3993_v43 = vld [vmem:[%s6500_s7 + $0x2a0] sm:$0xf] }
 0x443   : > { %v1204_v27 = vsel %vm1203_vm10, %v1202_v50, %v1188_v49  ;;  %v1192_v51 = vpop.permute.xlu1 %1191  ;;  %v3771_v49 = vld [vmem:[%s6500_s7 + $0x140] sm:$0xf0]  ;;  %v3777_v50 = vld [vmem:[%s6500_s7 + $0x108] sm:$0xf]  ;;  %v4671_v44 = vld [vmem:[%s6500_s7 + $0x2dc] sm:$0xf0] }
 0x444   : > { %v1206_v63 = vsel %vm1205_vm11, %v1204_v27, %v1192_v51  ;;  %v4620_v27 = vld [vmem:[%s6500_s7 + $0x144] sm:$0xf0]  ;;  %v3774_v51 = vor.u32 %v4611_v47, %v3771_v49  ;;  %1937 = vmatpush.bf16.msra.mxu3 %v3770_v48  ;;  %v3851_v47 = vld [vmem:[%s6500_s7 + $0x1d0] sm:$0xf0]  ;;  %v3857_v48 = vld [vmem:[%s6500_s7 + $0x198] sm:$0xf] }
 0x445   : > { %v1207_v52 = vpack.c.bf16 %v1206_v63, %v1206_v63  ;;  %v3778_v63 = vor.u32 %v4620_v27, %v3777_v50  ;;  %v4638_v49 = vld [vmem:[%s6500_s7 + $0x1d4] sm:$0xf0]  ;;  %v3854_v50 = vor.u32 %v4629_v45, %v3851_v47  ;;  %v4663_v45 = vld [vmem:[%s6500_s7 + $0x2a4] sm:$0xf] }
 0x446   : > { %v3858_v27 = vor.u32 %v4638_v49, %v3857_v48  ;;  %v4672_v48 = vld [vmem:[%s6500_s7 + $0x2e4] sm:$0xf0]  ;;  %v4664_v49 = vld [vmem:[%s6500_s7 + $0x2ac] sm:$0xf] }
 0x447   : > { %3638 = vmatmul.msk.bf16.vlgmr.msrb.gmra.mxu2 %vm567_vm0, %v1207_v52  ;;  %v4612_v52 = vld [vmem:[%s6500_s7 + $0x10c] sm:$0xf]  ;;  %1963 = vmatpush.bf16.msrb.mxu1 %v3778_v63  ;;  %v3859_v63 = vld [vmem:[%s6500_s7 + $0x1d8] sm:$0xf0] }
 0x44b   : > { %1964 = vmatpush.bf16.msrb.mxu1 %v3714_v0  ;;  %v3795_v0 = vld [vmem:[%s6500_s7 + $0x158] sm:$0xf0] }
 0x44f   : > { %1965 = vmatpush.bf16.msrb.mxu1 %v3650_v10  ;;  %v3731_v10 = vld [vmem:[%s6500_s7 + $0xd8] sm:$0xf0] }
 0x453   : > { %2012 = vmatpush.bf16.msra.mxu1 %v3986_v23  ;;  %v4582_v23 = vld [vmem:[%s6500_s7 + $0x1c] sm:$0xf] }
 0x457   : > { %2013 = vmatpush.bf16.msra.mxu1 %v3922_v41 }
 0x45b   : > { %2014 = vmatpush.bf16.msra.mxu1 %v3858_v27 }
 0x4ca   : > { %v1272_v54 = vpop.f32.mrf.mxu2 }
 0x4cb   : > { %v1273_v55 = vadd.f32 %v4864_v53, %v1272_v54  ;;  %v3779_v53 = vld [vmem:[%s6500_s7 + $0x148] sm:$0xf0] }
 0x4cc   : > { %v3782_v54 = vor.u32 %v4612_v52, %v3779_v53  ;;  %v3785_v53 = vld [vmem:[%s6500_s7 + $0x110] sm:$0xf] }
 0x4cd   : > { %v1276_v56 = vadd.f32 %v1273_v55, %v5184_v35  ;;  %v3963_v35 = vld [vmem:[%s6500_s7 + $0x2c0] sm:$0xf0]  ;;  %v3705_v55 = vld [vmem:[%s6500_s7 + $0x80] sm:$0xf] }
 0x4ce   : > { %v3966_v2 = vor.u32 %v4659_v62, %v3963_v35  ;;  %1976 = vmatpush.bf16.msra.mxu2 %v3782_v54  ;;  %v4596_v35 = vld [vmem:[%s6500_s7 + $0x8c] sm:$0xf]  ;;  %v4621_v54 = vld [vmem:[%s6500_s7 + $0x14c] sm:$0xf0] }
 0x4cf   : > { %v1279_v57 = vsel %vm567_vm0, %v1276_v56, 0.0  ;;  %v3718_v13 = vor.u32 %v4596_v35, %v3715_v1  ;;  %v3721_v1 = vld [vmem:[%s6500_s7 + $0x90] sm:$0xf] }
 0x4d0   : > { %1280 = vadd.xlane.f32.xlu0 %v1279_v57  ;;  %1947 = vmatpush.bf16.msrb.mxu0 %v3966_v2  ;;  %v4595_v57 = vld [vmem:[%s6500_s7 + $0x84] sm:$0xf]  ;;  %v3641_v2 = vld [vmem:[%s6500_s7] sm:$0xf] }
 0x4d1   : > { %v3710_v62 = vor.u32 %v4595_v57, %v3707_v59  ;;  %v3642_v5 = vor.u32 %v4587_v3, %v3641_v2  ;;  %v3787_v57 = vld [vmem:[%s6500_s7 + $0x150] sm:$0xf0]  ;;  %v4622_v59 = vld [vmem:[%s6500_s7 + $0x154] sm:$0xf0] }
 0x4d2   : > { %v1274_v58 = vpop.f32.mrf.mxu2  ;;  %1977 = vmatpush.bf16.msra.mxu2 %v3718_v13  ;;  %v4605_v13 = vld [vmem:[%s6500_s7 + $0xcc] sm:$0xf0]  ;;  %v4597_v2 = vld [vmem:[%s6500_s7 + $0x94] sm:$0xf] }
 0x4d3   : > { %v3722_v3 = vor.u32 %v4605_v13, %v3721_v1  ;;  %v3726_v7 = vor.u32 %v4597_v2, %v3723_v4  ;;  %v4639_v1 = vld [vmem:[%s6500_s7 + $0x1dc] sm:$0xf0]  ;;  %v3867_v4 = vld [vmem:[%s6500_s7 + $0x1e0] sm:$0xf0] }
 0x4d4   : > { %1948 = vmatpush.bf16.msrb.mxu0 %v3902_v14  ;;  %v3977_v14 = vld [vmem:[%s6500_s7 + $0x290] sm:$0xf] }
 0x4d5   : > { %v3978_v19 = vor.u32 %v4669_v16, %v3977_v14  ;;  %v3657_v14 = vld [vmem:[%s6500_s7 + $0x10] sm:$0xf]  ;;  %v4581_v16 = vld [vmem:[%s6500_s7 + $0x14] sm:$0xf] }
 0x4d6   : > { %1978 = vmatpush.bf16.msra.mxu2 %v3654_v15  ;;  %v4589_v15 = vld [vmem:[%s6500_s7 + $0x4c] sm:$0xf0] }
 0x4d7   : > { %v3658_v18 = vor.u32 %v4589_v15, %v3657_v14 }
 0x4d8   : > { %1949 = vmatpush.bf16.msrb.mxu0 %v3838_v40  ;;  %v3923_v40 = vld [vmem:[%s6500_s7 + $0x258] sm:$0xf0] }
 0x4d9   : > { %v3926_v42 = vor.u32 %v4646_v39, %v3923_v40  ;;  %v4866_v40 = vld [vmem:[%s6499_s6] ss:$0 sm:$0xff] }
 0x4dc   : > { %1950 = vmatpush.bf16.msrb.mxu0 %v3774_v51  ;;  %v4630_v51 = vld [vmem:[%s6500_s7 + $0x19c] sm:$0xf] }
 0x4dd   : > { %v3862_v52 = vor.u32 %v4630_v51, %v3859_v63  ;;  %v3994_v51 = vor.u32 %v4671_v44, %v3993_v43  ;;  %v3675_v43 = vld [vmem:[%s6500_s7 + $0x60] sm:$0xf0] }
 0x4e0   : > { %1951 = vmatpush.bf16.msrb.mxu0 %v3710_v62  ;;  %v4614_v62 = vld [vmem:[%s6500_s7 + $0x11c] sm:$0xf] }
 0x4e1   : > { %v3798_v35 = vor.u32 %v4614_v62, %v3795_v0 }
 0x4e4   : > { %1952 = vmatpush.bf16.msrb.mxu0 %v3646_v9  ;;  %v4598_v9 = vld [vmem:[%s6500_s7 + $0x9c] sm:$0xf] }
 0x4e5   : > { %v3734_v11 = vor.u32 %v4598_v9, %v3731_v10 }
 0x4e8   : > { %1999 = vmatpush.bf16.msra.mxu0 %v3982_v20  ;;  %v3665_v20 = vld [vmem:[%s6500_s7 + $0x18] sm:$0xf] }
 0x4ec   : > { %2000 = vmatpush.bf16.msra.mxu0 %v3918_v37 }
 0x4f0   : > { %2001 = vmatpush.bf16.msra.mxu0 %v3854_v50  ;;  %v4003_v50 = vld [vmem:[%s6500_s7 + $0x2e8] sm:$0xf0] }
 0x543   : > { %v1281_v25 = vpop.xlane.xlu0 %1280 }
 0x544   : > { %v1289_v28 = vmul.f32 %v5454_v24, %v1281_v25  ;;  %v3987_v25 = vld [vmem:[%s6500_s7 + $0x2d8] sm:$0xf0] }
 0x546   : > { %v5457_v29 = vsub.f32 %v1276_v56, %v1289_v28  ;;  %v4603_v56 = vld [vmem:[%s6500_s7 + $0xbc] sm:$0xf0]  ;;  %v3913_v28 = vld [vmem:[%s6500_s7 + $0x210] sm:$0xf] }
 0x547   : > { %v3706_v58 = vor.u32 %v4603_v56, %v3705_v55  ;;  %v4613_v55 = vld [vmem:[%s6500_s7 + $0x114] sm:$0xf]  ;;  %v3786_v56 = vor.u32 %v4621_v54, %v3785_v53  ;;  %v4655_v53 = vld [vmem:[%s6500_s7 + $0x25c] sm:$0xf0] }
 0x548   : > { %v1291_v30 = vmul.f32 %v5457_v29, %v5457_v29  ;;  %v3790_v60 = vor.u32 %v4613_v55, %v3787_v57  ;;  %v4006_v55 = vor.u32 %v4664_v49, %v4003_v50  ;;  %v3931_v57 = vld [vmem:[%s6500_s7 + $0x260] sm:$0xf0]  ;;  %v3683_v49 = vld [vmem:[%s6500_s7 + $0x68] sm:$0xf0]  ;;  %v4009_v50 = vld [vmem:[%s6500_s7 + $0x2b0] sm:$0xf] }
 0x549   : > { %1938 = vmatpush.bf16.msra.mxu3 %v3706_v58  ;;  %v3793_v58 = vld [vmem:[%s6500_s7 + $0x118] sm:$0xf] }
 0x54a   : > { %v1292_v31 = vsel %vm567_vm0, %v1291_v30, 0.0  ;;  %v4653_v30 = vld [vmem:[%s6500_s7 + $0x24c] sm:$0xf0]  ;;  %v3794_v61 = vor.u32 %v4622_v59, %v3793_v58  ;;  %2002 = vmatpush.bf16.msra.mxu0 %v3790_v60  ;;  %v3937_v58 = vld [vmem:[%s6500_s7 + $0x228] sm:$0xf] }
 0x54b   : > { %1293 = vadd.xlane.f32.xlu2 %v1292_v31  ;;  %v3990_v31 = vor.u32 %v4662_v22, %v3987_v25  ;;  %v3914_v32 = vor.u32 %v4653_v30, %v3913_v28  ;;  %v3666_v22 = vor.u32 %v4590_v26, %v3665_v20  ;;  %v3667_v25 = vld [vmem:[%s6500_s7 + $0x58] sm:$0xf0]  ;;  %v4656_v59 = vld [vmem:[%s6500_s7 + $0x264] sm:$0xf0]  ;;  %v4648_v60 = vld [vmem:[%s6500_s7 + $0x22c] sm:$0xf] }
 0x54c   : > { %2015 = vmatpush.bf16.msra.mxu1 %v3794_v61  ;;  %v3670_v30 = vor.u32 %v4582_v23, %v3667_v25  ;;  %v3939_v61 = vld [vmem:[%s6500_s7 + $0x268] sm:$0xf0]  ;;  %v3938_v13 = vor.u32 %v4656_v59, %v3937_v58  ;;  %v3737_v23 = vld [vmem:[%s6500_s7 + $0xa0] sm:$0xf]  ;;  %v4019_v58 = vld [vmem:[%s6500_s7 + $0x2f8] sm:$0xf0] }
 0x54d   : > { %1939 = vmatpush.bf16.msra.mxu3 %v3642_v5  ;;  %2025 = vmatpush.bf16.msrb.mxu2 %v3990_v31  ;;  %v3729_v5 = vld [vmem:[%s6500_s7 + $0x98] sm:$0xf]  ;;  %v3942_v2 = vor.u32 %v4648_v60, %v3939_v61  ;;  %v4616_v20 = vld [vmem:[%s6500_s7 + $0x12c] sm:$0xf]  ;;  %v4607_v25 = vld [vmem:[%s6500_s7 + $0xdc] sm:$0xf0] }
 0x54e   : > { %v3730_v8 = vor.u32 %v4606_v6, %v3729_v5  ;;  %2003 = vmatpush.bf16.msra.mxu0 %v3726_v7  ;;  %v3873_v5 = vld [vmem:[%s6500_s7 + $0x1a8] sm:$0xf]  ;;  %v4632_v7 = vld [vmem:[%s6500_s7 + $0x1ac] sm:$0xf] }
 0x54f   : > { %v4640_v6 = vld [vmem:[%s6500_s7 + $0x1e4] sm:$0xf0]  ;;  %v3811_v26 = vld [vmem:[%s6500_s7 + $0x168] sm:$0xf0] }
 0x550   : > { %2016 = vmatpush.bf16.msra.mxu1 %v3730_v8  ;;  %v3875_v8 = vld [vmem:[%s6500_s7 + $0x1e8] sm:$0xf0]  ;;  %v3874_v14 = vor.u32 %v4640_v6, %v3873_v5  ;;  %v4658_v5 = vld [vmem:[%s6500_s7 + $0x274] sm:$0xf0]  ;;  %v4650_v6 = vld [vmem:[%s6500_s7 + $0x23c] sm:$0xf] }
 0x551   : > { %1986 = vmatpush.bf16.msrb.mxu3 %v3978_v19  ;;  %2026 = vmatpush.bf16.msrb.mxu2 %v3926_v42  ;;  %v3659_v19 = vld [vmem:[%s6500_s7 + $0x50] sm:$0xf0]  ;;  %v3878_v15 = vor.u32 %v4632_v7, %v3875_v8  ;;  %v3955_v7 = vld [vmem:[%s6500_s7 + $0x278] sm:$0xf0] }
 0x552   : > { %v3662_v21 = vor.u32 %v4581_v16, %v3659_v19  ;;  %v4615_v16 = vld [vmem:[%s6500_s7 + $0x124] sm:$0xf]  ;;  %v4624_v19 = vld [vmem:[%s6500_s7 + $0x164] sm:$0xf0] }
 0x554   : > { %2004 = vmatpush.bf16.msra.mxu0 %v3662_v21  ;;  %2017 = vmatpush.bf16.msra.mxu1 %v3666_v22 }
 0x555   : > { %1987 = vmatpush.bf16.msrb.mxu3 %v3914_v32  ;;  %2027 = vmatpush.bf16.msrb.mxu2 %v3862_v52  ;;  %v3929_v52 = vld [vmem:[%s6500_s7 + $0x220] sm:$0xf] }
 0x556   : > { %v3930_v62 = vor.u32 %v4655_v53, %v3929_v52  ;;  %v4011_v52 = vld [vmem:[%s6500_s7 + $0x2f0] sm:$0xf0]  ;;  %v4017_v53 = vld [vmem:[%s6500_s7 + $0x2b8] sm:$0xf] }
 0x559   : > { %1988 = vmatpush.bf16.msrb.mxu3 %v3850_v46  ;;  %2028 = vmatpush.bf16.msrb.mxu2 %v3798_v35  ;;  %v3995_v46 = vld [vmem:[%s6500_s7 + $0x2e0] sm:$0xf0]  ;;  %v3865_v35 = vld [vmem:[%s6500_s7 + $0x1a0] sm:$0xf] }
 0x55a   : > { %v3998_v63 = vor.u32 %v4663_v45, %v3995_v46  ;;  %v3866_v9 = vor.u32 %v4639_v1, %v3865_v35  ;;  %v3681_v46 = vld [vmem:[%s6500_s7 + $0x28] sm:$0xf]  ;;  %v4657_v35 = vld [vmem:[%s6500_s7 + $0x26c] sm:$0xf0] }
 0x55d   : > { %1989 = vmatpush.bf16.msrb.mxu3 %v3786_v56  ;;  %2029 = vmatpush.bf16.msrb.mxu2 %v3734_v11  ;;  %v4647_v56 = vld [vmem:[%s6500_s7 + $0x224] sm:$0xf]  ;;  %v3801_v11 = vld [vmem:[%s6500_s7 + $0x120] sm:$0xf] }
 0x55e   : > { %v3934_v0 = vor.u32 %v4647_v56, %v3931_v57  ;;  %v4674_v56 = vld [vmem:[%s6500_s7 + $0x2f4] sm:$0xf0]  ;;  %v4666_v57 = vld [vmem:[%s6500_s7 + $0x2bc] sm:$0xf] }
 0x55f   : > { %v4018_v1 = vor.u32 %v4674_v56, %v4017_v53  ;;  %v3697_v56 = vld [vmem:[%s6500_s7 + $0x38] sm:$0xf] }
 0x561   : > { %1990 = vmatpush.bf16.msrb.mxu3 %v3722_v3  ;;  %2030 = vmatpush.bf16.msrb.mxu2 %v3670_v30  ;;  %v4631_v3 = vld [vmem:[%s6500_s7 + $0x1a4] sm:$0xf]  ;;  %v3814_v30 = vor.u32 %v4616_v20, %v3811_v26  ;;  %v3891_v20 = vld [vmem:[%s6500_s7 + $0x1f8] sm:$0xf0] }
 0x562   : > { %v3870_v10 = vor.u32 %v4631_v3, %v3867_v4  ;;  %v3947_v3 = vld [vmem:[%s6500_s7 + $0x270] sm:$0xf0]  ;;  %v3953_v4 = vld [vmem:[%s6500_s7 + $0x238] sm:$0xf] }
 0x565   : > { %1991 = vmatpush.bf16.msrb.mxu3 %v3658_v18  ;;  %v3809_v18 = vld [vmem:[%s6500_s7 + $0x128] sm:$0xf] }
 0x5be   : > { %v1294_v12 = vpop.xlane.xlu2 %1293 }
 0x5bf   : > { %v1295_v17 = vmul.f32 %v1294_v12, %v5454_v24  ;;  %v4623_v12 = vld [vmem:[%s6500_s7 + $0x15c] sm:$0xf0] }
 0x5c0   : > { %v3802_v21 = vor.u32 %v4623_v12, %v3801_v11  ;;  %v3958_v11 = vor.u32 %v4650_v6, %v3955_v7  ;;  %v3881_v12 = vld [vmem:[%s6500_s7 + $0x1b0] sm:$0xf]  ;;  %v4688_v7 = vld [vmem:[%s6502_s9 + $0x68] sm:$0xff] }
 0x5c1   : > { %v1296_v28 = vadd.f32 1e-05, %v1295_v17  ;;  %v3803_v17 = vld [vmem:[%s6500_s7 + $0x160] sm:$0xf0]  ;;  %v4705_v6 = vld [vmem:[%s6502_s9 + $0xf0] sm:$0xff] }
 0x5c2   : > { %v3806_v22 = vor.u32 %v4615_v16, %v3803_v17  ;;  %v3883_v16 = vld [vmem:[%s6500_s7 + $0x1f0] sm:$0xf0]  ;;  %v3889_v17 = vld [vmem:[%s6500_s7 + $0x1b8] sm:$0xf] }
 0x5c3   : > { %4904 = vrsqrt.f32 %v1296_v28  ;;  %vm1303_vm14 = vweird.f32 %v1296_v28 }
 0x5c9   : > { %v4905_v31 = vpop.eup %4904 }
 0x5ca   : > { %v1298_v32 = vmul.f32 %v4905_v31, %v1296_v28  ;;  %vm1304_vm13 = vweird.f32 %v4905_v31  ;;  %v3810_v28 = vor.u32 %v4624_v19, %v3809_v18  ;;  %v4642_v18 = vld [vmem:[%s6500_s7 + $0x1f4] sm:$0xf0]  ;;  %v4634_v19 = vld [vmem:[%s6500_s7 + $0x1bc] sm:$0xf] }
 0x5cb   : > { %vm1305_vm15 = vmor %vm1303_vm14, %vm1304_vm13 }
 0x5cc   : > { %v1299_v33 = vmul.f32 %v4905_v31, %v1298_v32  ;;  %v3739_v32 = vld [vmem:[%s6500_s7 + $0xe0] sm:$0xf0] }
 0x5ce   : > { %v1300_v34 = vmul.f32 0.5, %v1299_v33  ;;  %v3745_v33 = vld [vmem:[%s6500_s7 + $0xa8] sm:$0xf] }
 0x5d0   : > { %v1301_v36 = vsub.f32 1.5, %v1300_v34  ;;  %v4608_v34 = vld [vmem:[%s6500_s7 + $0xe4] sm:$0xf0] }
 0x5d1   : > { %v3746_v44 = vor.u32 %v4608_v34, %v3745_v33  ;;  %v4626_v33 = vld [vmem:[%s6500_s7 + $0x174] sm:$0xf0]  ;;  %v4618_v34 = vld [vmem:[%s6500_s7 + $0x13c] sm:$0xf] }
 0x5d2   : > { %v1302_v37 = vmul.f32 %v4905_v31, %v1301_v36  ;;  %v4600_v36 = vld [vmem:[%s6500_s7 + $0xac] sm:$0xf] }
 0x5d4   : > { %v1306_v39 = vsel %vm1305_vm15, %v4905_v31, %v1302_v37  ;;  %v4599_v31 = vld [vmem:[%s6500_s7 + $0xa4] sm:$0xf]  ;;  %v3747_v37 = vld [vmem:[%s6500_s7 + $0xe8] sm:$0xf0] }
 0x5d5   : > { %v1307_v41 = vmul.f32 %v1306_v39, %v5457_v29  ;;  %v4001_v29 = vld [vmem:[%s6500_s7 + $0x2a8] sm:$0xf]  ;;  %v3738_v39 = vor.u32 %v4607_v25, %v3737_v23  ;;  %v3750_v45 = vor.u32 %v4600_v36, %v3747_v37  ;;  %v4625_v23 = vld [vmem:[%s6500_s7 + $0x16c] sm:$0xf0]  ;;  %v3890_v25 = vor.u32 %v4642_v18, %v3889_v17  ;;  %v3827_v36 = vld [vmem:[%s6500_s7 + $0x178] sm:$0xf0] }
 0x5d6   : > { %v4002_v54 = vor.u32 %v4672_v48, %v4001_v29  ;;  %v4592_v29 = vld [vmem:[%s6500_s7 + $0x64] sm:$0xf0]  ;;  %v4584_v48 = vld [vmem:[%s6500_s7 + $0x2c] sm:$0xf]  ;;  %v4678_v17 = vld [vmem:[%s6502_s9 + $0x18] sm:$0xff] }
 0x5d7   : > { %v1311_v42 = vmul.f32 %v4865_v38, %v1307_v41  ;;  %v3673_v38 = vld [vmem:[%s6500_s7 + $0x20] sm:$0xf]  ;;  %v3682_v59 = vor.u32 %v4592_v29, %v3681_v46  ;;  %v3686_v60 = vor.u32 %v4584_v48, %v3683_v49  ;;  %v4610_v46 = vld [vmem:[%s6500_s7 + $0xf4] sm:$0xf0]  ;;  %v4602_v29 = vld [vmem:[%s6500_s7 + $0xbc] sm:$0xf] }
 0x5d8   : > { %v4591_v41 = vld [vmem:[%s6500_s7 + $0x5c] sm:$0xf0]  ;;  %v3763_v48 = vld [vmem:[%s6500_s7 + $0xf8] sm:$0xf0] }
 0x5d9   : > { %v5725_v47 = vadd.f32 %v4866_v40, %v1311_v42  ;;  %v3742_v40 = vor.u32 %v4599_v31, %v3739_v32  ;;  %v4583_v42 = vld [vmem:[%s6500_s7 + $0x24] sm:$0xf]  ;;  %v3819_v31 = vld [vmem:[%s6500_s7 + $0x170] sm:$0xf0]  ;;  %v3825_v32 = vld [vmem:[%s6500_s7 + $0x138] sm:$0xf]  ;;  %v3766_v53 = vor.u32 %v4602_v29, %v3763_v48 }
 0x5da   : > { %v4702_v18 = vld [vmem:[%s6502_s9 + $0xd8] sm:$0xff]  ;;  %v4719_v29 = vld [vmem:[%s6502_s9 + $0x160] sm:$0xff] }
 0x5db   : > { %v5738_v27 = vpack.c.bf16 %v5725_v47, %v5725_v47  ;;  %v4727_v48 = vld [vmem:[%s6502_s9 + $0x1a0] sm:$0xff] }
 0x5dd   : > { %4023 = vmatmul.msk.bf16.vlgmr.msra.gmra.mxu3 %vm567_vm0, %v5738_v27  ;;  %4024 = vmatmul.msk.bf16.vlgmr.msrb.gmra.mxu0 %vm567_vm0, %v5738_v27 }
 0x5de   : > { %4025 = vmatmul.msk.bf16.vlgmr.msrb.gmra.mxu1 %vm567_vm0, %v5738_v27  ;;  %4026 = vmatmul.msk.bf16.vlgmr.msra.gmra.mxu2 %vm567_vm0, %v5738_v27 }
 0x5df   : > { %2038 = vmatpush.bf16.msra.mxu3 %v3994_v51  ;;  %2051 = vmatpush.bf16.msrb.mxu0 %v3998_v63  ;;  %v4673_v51 = vld [vmem:[%s6500_s7 + $0x2ec] sm:$0xf0]  ;;  %v4665_v63 = vld [vmem:[%s6500_s7 + $0x2b4] sm:$0xf] }
 0x5e0   : > { %2064 = vmatpush.bf16.msrb.mxu1 %v4002_v54  ;;  %2077 = vmatpush.bf16.msra.mxu2 %v4006_v55  ;;  %v3674_v54 = vor.u32 %v4591_v41, %v3673_v38  ;;  %v3678_v55 = vor.u32 %v4583_v42, %v3675_v43  ;;  %v4010_v61 = vor.u32 %v4673_v51, %v4009_v50  ;;  %v4601_v43 = vld [vmem:[%s6500_s7 + $0xb4] sm:$0xf]  ;;  %v3689_v51 = vld [vmem:[%s6500_s7 + $0x30] sm:$0xf] }
 0x5e1   : > { %v3826_v41 = vor.u32 %v4626_v33, %v3825_v32  ;;  %v3830_v42 = vor.u32 %v4618_v34, %v3827_v36  ;;  %v4722_v32 = vld [vmem:[%s6502_s9 + $0x178] sm:$0xff]  ;;  %v4675_v34 = vld [vmem:[%s6502_s9] sm:$0xff] }
 0x5e2   : > { %v4730_v33 = vld [vmem:[%s6502_s9 + $0x1b8] sm:$0xff]  ;;  %v4699_v36 = vld [vmem:[%s6502_s9 + $0xc0] sm:$0xff] }
 0x5e3   : > { %2039 = vmatpush.bf16.msra.mxu3 %v3930_v62  ;;  %2052 = vmatpush.bf16.msrb.mxu0 %v3934_v0  ;;  %v4014_v62 = vor.u32 %v4665_v63, %v4011_v52  ;;  %v3945_v0 = vld [vmem:[%s6500_s7 + $0x230] sm:$0xf] }
 0x5e4   : > { %2065 = vmatpush.bf16.msrb.mxu1 %v3938_v13  ;;  %2078 = vmatpush.bf16.msra.mxu2 %v3942_v2  ;;  %v4022_v13 = vor.u32 %v4666_v57, %v4019_v58  ;;  %v4649_v2 = vld [vmem:[%s6500_s7 + $0x234] sm:$0xf]  ;;  %v3946_v8 = vor.u32 %v4657_v35, %v3945_v0  ;;  %v4593_v63 = vld [vmem:[%s6500_s7 + $0x6c] sm:$0xf0]  ;;  %v4594_v57 = vld [vmem:[%s6500_s7 + $0x74] sm:$0xf0] }
 0x5e5   : > { %v4586_v58 = vld [vmem:[%s6500_s7 + $0x3c] sm:$0xf] }
 0x5e6   : > { %v4690_v35 = vld [vmem:[%s6502_s9 + $0x78] sm:$0xff] }
 0x5e7   : > { %2040 = vmatpush.bf16.msra.mxu3 %v3866_v9  ;;  %2053 = vmatpush.bf16.msrb.mxu0 %v3870_v10  ;;  %v3950_v9 = vor.u32 %v4649_v2, %v3947_v3  ;;  %v3954_v10 = vor.u32 %v4658_v5, %v3953_v4  ;;  %v4706_v2 = vld [vmem:[%s6502_s9 + $0xf8] sm:$0xff]  ;;  %v4689_v3 = vld [vmem:[%s6502_s9 + $0x70] sm:$0xff] }
 0x5e8   : > { %2066 = vmatpush.bf16.msrb.mxu1 %v3874_v14  ;;  %2079 = vmatpush.bf16.msra.mxu2 %v3878_v15  ;;  %v4641_v14 = vld [vmem:[%s6500_s7 + $0x1ec] sm:$0xf0]  ;;  %v4633_v15 = vld [vmem:[%s6500_s7 + $0x1b4] sm:$0xf] }
 0x5e9   : > { %v3882_v26 = vor.u32 %v4641_v14, %v3881_v12  ;;  %v4697_v4 = vld [vmem:[%s6502_s9 + $0xb0] sm:$0xff]  ;;  %v4679_v12 = vld [vmem:[%s6502_s9 + $0x20] sm:$0xff] }
 0x5ea   : > { %v4681_v5 = vld [vmem:[%s6502_s9 + $0x30] sm:$0xff]  ;;  %v4703_v14 = vld [vmem:[%s6502_s9 + $0xe0] sm:$0xff] }
 0x5eb   : > { %2041 = vmatpush.bf16.msra.mxu3 %v3802_v21  ;;  %2054 = vmatpush.bf16.msrb.mxu0 %v3806_v22  ;;  %v3886_v21 = vor.u32 %v4633_v15, %v3883_v16  ;;  %v3817_v22 = vld [vmem:[%s6500_s7 + $0x130] sm:$0xf]  ;;  %v4686_v15 = vld [vmem:[%s6502_s9 + $0x58] sm:$0xff] }
 0x5ec   : > { %2067 = vmatpush.bf16.msrb.mxu1 %v3810_v28  ;;  %2080 = vmatpush.bf16.msra.mxu2 %v3814_v30  ;;  %v3894_v28 = vor.u32 %v4634_v19, %v3891_v20  ;;  %v4617_v30 = vld [vmem:[%s6500_s7 + $0x134] sm:$0xf]  ;;  %v3818_v37 = vor.u32 %v4625_v23, %v3817_v22  ;;  %v4694_v16 = vld [vmem:[%s6502_s9 + $0x98] sm:$0xff]  ;;  %v4684_v22 = vld [vmem:[%s6502_s9 + $0x48] sm:$0xff] }
 0x5ed   : > { %4027 = vmatmul.msk.bf16.vlgmr.msrb.gmra.mxu3 %vm567_vm0, %v5738_v27  ;;  %4028 = vmatmul.msk.bf16.vlgmr.msra.gmra.mxu0 %vm567_vm0, %v5738_v27  ;;  %v3822_v38 = vor.u32 %v4617_v30, %v3819_v31  ;;  %v4685_v19 = vld [vmem:[%s6502_s9 + $0x50] sm:$0xff]  ;;  %v4692_v23 = vld [vmem:[%s6502_s9 + $0x88] sm:$0xff]  ;;  %v4683_v30 = vld [vmem:[%s6502_s9 + $0x40] sm:$0xff] }
 0x5ee   : > { %4029 = vmatmul.msk.bf16.vlgmr.msra.gmra.mxu1 %vm567_vm0, %v5738_v27  ;;  %4030 = vmatmul.msk.bf16.vlgmr.msrb.gmra.mxu2 %vm567_vm0, %v5738_v27  ;;  %v4693_v20 = vld [vmem:[%s6502_s9 + $0x90] sm:$0xff]  ;;  %v4691_v31 = vld [vmem:[%s6502_s9 + $0x80] sm:$0xff] }
 0x5ef   : > { %2042 = vmatpush.bf16.msra.mxu3 %v3738_v39  ;;  %2055 = vmatpush.bf16.msrb.mxu0 %v3742_v40  ;;  %v3753_v39 = vld [vmem:[%s6500_s7 + $0xb0] sm:$0xf] }
 0x5f0   : > { %2068 = vmatpush.bf16.msrb.mxu1 %v3746_v44  ;;  %2081 = vmatpush.bf16.msra.mxu2 %v3750_v45  ;;  %v4609_v40 = vld [vmem:[%s6500_s7 + $0xec] sm:$0xf0]  ;;  %v3755_v44 = vld [vmem:[%s6500_s7 + $0xf0] sm:$0xf0]  ;;  %v3761_v45 = vld [vmem:[%s6500_s7 + $0xb8] sm:$0xf] }
 0x5f1   : > { %v3754_v49 = vor.u32 %v4609_v40, %v3753_v39  ;;  %v3758_v50 = vor.u32 %v4601_v43, %v3755_v44  ;;  %v3762_v52 = vor.u32 %v4610_v46, %v3761_v45  ;;  %v4721_v39 = vld [vmem:[%s6502_s9 + $0x170] sm:$0xff]  ;;  %v4720_v43 = vld [vmem:[%s6502_s9 + $0x168] sm:$0xff] }
 0x5f2   : > { %v4729_v40 = vld [vmem:[%s6502_s9 + $0x1b0] sm:$0xff]  ;;  %v4728_v44 = vld [vmem:[%s6502_s9 + $0x1a8] sm:$0xff] }
 0x5f3   : > { %2043 = vmatpush.bf16.msra.mxu3 %v3674_v54  ;;  %2056 = vmatpush.bf16.msrb.mxu0 %v3678_v55  ;;  %v4585_v54 = vld [vmem:[%s6500_s7 + $0x34] sm:$0xf]  ;;  %v4712_v45 = vld [vmem:[%s6502_s9 + $0x128] sm:$0xff] }
 0x5f4   : > { %2069 = vmatpush.bf16.msrb.mxu1 %v3682_v59  ;;  %2082 = vmatpush.bf16.msra.mxu2 %v3686_v60  ;;  %v3691_v55 = vld [vmem:[%s6500_s7 + $0x70] sm:$0xf0]  ;;  %v3699_v59 = vld [vmem:[%s6500_s7 + $0x78] sm:$0xf0]  ;;  %v3690_v60 = vor.u32 %v4593_v63, %v3689_v51  ;;  %v4736_v46 = vld [vmem:[%s6502_s9 + $0x1e8] sm:$0xff] }
 0x5f5   : > { %v3702_v0 = vor.u32 %v4586_v58, %v3699_v59  ;;  %v4718_v51 = vld [vmem:[%s6502_s9 + $0x158] sm:$0xff]  ;;  %v4709_v58 = vld [vmem:[%s6502_s9 + $0x110] sm:$0xff] }
 0x5f6   : > { %v4726_v63 = vld [vmem:[%s6502_s9 + $0x198] sm:$0xff]  ;;  %v4733_v59 = vld [vmem:[%s6502_s9 + $0x1d0] sm:$0xff] }
 0x5f7   : > { %2090 = vmatpush.bf16.msrb.mxu3 %v4010_v61  ;;  %2103 = vmatpush.bf16.msra.mxu0 %v4014_v62  ;;  %v3694_v61 = vor.u32 %v4585_v54, %v3691_v55  ;;  %v3698_v62 = vor.u32 %v4594_v57, %v3697_v56  ;;  %v4710_v54 = vld [vmem:[%s6502_s9 + $0x118] sm:$0xff]  ;;  %v4716_v56 = vld [vmem:[%s6502_s9 + $0x148] sm:$0xff] }
 0x5f8   : > { %2116 = vmatpush.bf16.msra.mxu1 %v4018_v1  ;;  %2129 = vmatpush.bf16.msrb.mxu2 %v4022_v13  ;;  %v4698_v1 = vld [vmem:[%s6502_s9 + $0xb8] sm:$0xff]  ;;  %v4724_v57 = vld [vmem:[%s6502_s9 + $0x188] sm:$0xff] }
 0x5f9   : > { %v4682_v13 = vld [vmem:[%s6502_s9 + $0x38] sm:$0xff] }
 0x5fa   : > { %v4734_v55 = vld [vmem:[%s6502_s9 + $0x1d8] sm:$0xff] }
 0x5fb   : > { %2091 = vmatpush.bf16.msrb.mxu3 %v3946_v8  ;;  %2104 = vmatpush.bf16.msra.mxu0 %v3950_v9  ;;  %v4680_v8 = vld [vmem:[%s6502_s9 + $0x28] sm:$0xff] }
 0x5fc   : > { %2117 = vmatpush.bf16.msra.mxu1 %v3954_v10  ;;  %2130 = vmatpush.bf16.msrb.mxu2 %v3958_v11  ;;  %v4704_v9 = vld [vmem:[%s6502_s9 + $0xe8] sm:$0xff]  ;;  %v4687_v10 = vld [vmem:[%s6502_s9 + $0x60] sm:$0xff] }
 0x5fd   : > { %4031 = vmatmul.msk.bf16.vlgmr.msra.gmra.mxu3 %vm567_vm0, %v5738_v27  ;;  %4032 = vmatmul.msk.bf16.vlgmr.msrb.gmra.mxu0 %vm567_vm0, %v5738_v27  ;;  %v4695_v11 = vld [vmem:[%s6502_s9 + $0xa0] sm:$0xff] }
 0x5fe   : > { %4033 = vmatmul.msk.bf16.vlgmr.msrb.gmra.mxu1 %vm567_vm0, %v5738_v27  ;;  %4034 = vmatmul.msk.bf16.vlgmr.msra.gmra.mxu2 %vm567_vm0, %v5738_v27 }
 0x5ff   : > { %2092 = vmatpush.bf16.msrb.mxu3 %v3882_v26  ;;  %2105 = vmatpush.bf16.msra.mxu0 %v3886_v21  ;;  %v4677_v26 = vld [vmem:[%s6502_s9 + $0x10] sm:$0xff] }
 0x600   : > { %2118 = vmatpush.bf16.msra.mxu1 %v3890_v25  ;;  %2131 = vmatpush.bf16.msrb.mxu2 %v3894_v28  ;;  %v4701_v21 = vld [vmem:[%s6502_s9 + $0xd0] sm:$0xff]  ;;  %v4676_v25 = vld [vmem:[%s6502_s9 + $0x8] sm:$0xff] }
 0x601   : > { %v4700_v28 = vld [vmem:[%s6502_s9 + $0xc8] sm:$0xff] }
 0x603   : > { %2093 = vmatpush.bf16.msrb.mxu3 %v3818_v37  ;;  %2106 = vmatpush.bf16.msra.mxu0 %v3822_v38  ;;  %v4714_v37 = vld [vmem:[%s6502_s9 + $0x138] sm:$0xff] }
 0x604   : > { %2119 = vmatpush.bf16.msra.mxu1 %v3826_v41  ;;  %2132 = vmatpush.bf16.msrb.mxu2 %v3830_v42  ;;  %v4738_v38 = vld [vmem:[%s6502_s9 + $0x1f8] sm:$0xff]  ;;  %v4713_v41 = vld [vmem:[%s6502_s9 + $0x130] sm:$0xff] }
 0x605   : > { %v4737_v42 = vld [vmem:[%s6502_s9 + $0x1f0] sm:$0xff] }
 0x607   : > { %2094 = vmatpush.bf16.msrb.mxu3 %v3754_v49  ;;  %2107 = vmatpush.bf16.msra.mxu0 %v3758_v50  ;;  %v4711_v49 = vld [vmem:[%s6502_s9 + $0x120] sm:$0xff] }
 0x608   : > { %2120 = vmatpush.bf16.msra.mxu1 %v3762_v52  ;;  %2133 = vmatpush.bf16.msrb.mxu2 %v3766_v53  ;;  %v4735_v50 = vld [vmem:[%s6502_s9 + $0x1e0] sm:$0xff]  ;;  %v4717_v52 = vld [vmem:[%s6502_s9 + $0x150] sm:$0xff] }
 0x609   : > { %v4725_v53 = vld [vmem:[%s6502_s9 + $0x190] sm:$0xff] }
 0x60b   : > { %2095 = vmatpush.bf16.msrb.mxu3 %v3690_v60  ;;  %2108 = vmatpush.bf16.msra.mxu0 %v3694_v61  ;;  %v4715_v60 = vld [vmem:[%s6502_s9 + $0x140] sm:$0xff] }
 0x60c   : > { %2121 = vmatpush.bf16.msra.mxu1 %v3698_v62  ;;  %2134 = vmatpush.bf16.msrb.mxu2 %v3702_v0  ;;  %v4723_v61 = vld [vmem:[%s6502_s9 + $0x180] sm:$0xff]  ;;  %v4708_v62 = vld [vmem:[%s6502_s9 + $0x108] sm:$0xff] }
 0x60d   : > { %v4732_v0 = vld [vmem:[%s6502_s9 + $0x1c8] sm:$0xff] }
 0x60e   : > { %4035 = vmatmul.msk.bf16.vlgmr.msrb.gmra.mxu3 %vm567_vm0, %v5738_v27  ;;  %4036 = vmatmul.msk.bf16.vlgmr.msra.gmra.mxu0 %vm567_vm0, %v5738_v27 }
 0x60f   : > { %3213 = vmatpush.bf16.msrb.mxu0 %v4690_v35  ;;  %4037 = vmatmul.msk.bf16.vlgmr.msra.gmra.mxu1 %vm567_vm0, %v5738_v27  ;;  %v4707_v35 = vld [vmem:[%s6502_s9 + $0x100] sm:$0xff] }
 0x610   : > { %3226 = vmatpush.bf16.msrb.mxu1 %v4698_v1  ;;  %4038 = vmatmul.msk.bf16.vlgmr.msrb.gmra.mxu2 %vm567_vm0, %v5738_v27  ;;  %v4696_v27 = vld [vmem:[%s6502_s9 + $0xa8] sm:$0xff]  ;;  %v4731_v1 = vld [vmem:[%s6502_s9 + $0x1c0] sm:$0xff] }
 0x611   : > { %3200 = vmatpush.bf16.msra.mxu3 %v4682_v13  ;;  %3239 = vmatpush.bf16.msra.mxu2 %v4706_v2  ;;  %v6231_v13 = vld [vmem:[%s6501_s8] sm:$0xff] }
 0x612   : > { %v1418_v2 = vperm.slane %v6231_v13, 1 }
 0x613   : > { %3214 = vmatpush.bf16.msrb.mxu0 %v4689_v3  ;;  %v1419_v3 = vperm.slane %v6231_v13, 2 }
 0x614   : > { %3227 = vmatpush.bf16.msrb.mxu1 %v4697_v4 }
 0x615   : > { %3201 = vmatpush.bf16.msra.mxu3 %v4681_v5  ;;  %3240 = vmatpush.bf16.msra.mxu2 %v4705_v6 }
 0x617   : > { %3215 = vmatpush.bf16.msrb.mxu0 %v4688_v7 }
 0x618   : > { %3228 = vmatpush.bf16.msrb.mxu1 %v4696_v27 }
 0x619   : > { %3202 = vmatpush.bf16.msra.mxu3 %v4680_v8  ;;  %3241 = vmatpush.bf16.msra.mxu2 %v4704_v9  ;;  %v1417_v8 = vperm.slane %v6231_v13, 0 }
 0x61b   : > { %3216 = vmatpush.bf16.msrb.mxu0 %v4687_v10  ;;  %v1420_v10 = vperm.slane %v6231_v13, 3 }
 0x61c   : > { %3229 = vmatpush.bf16.msrb.mxu1 %v4695_v11  ;;  %v4754_v11 = vld [vmem:[%s6502_s9 + $0x278] sm:$0xff] }
 0x61d   : > { %3203 = vmatpush.bf16.msra.mxu3 %v4679_v12  ;;  %3242 = vmatpush.bf16.msra.mxu2 %v4703_v14  ;;  %v4762_v14 = vld [vmem:[%s6502_s9 + $0x2b8] sm:$0xff] }
 0x61f   : > { %3217 = vmatpush.bf16.msrb.mxu0 %v4686_v15 }
 0x620   : > { %3230 = vmatpush.bf16.msrb.mxu1 %v4694_v16 }
 0x621   : > { %3204 = vmatpush.bf16.msra.mxu3 %v4678_v17  ;;  %3243 = vmatpush.bf16.msra.mxu2 %v4702_v18 }
 0x623   : > { %3218 = vmatpush.bf16.msrb.mxu0 %v4685_v19 }
 0x624   : > { %3231 = vmatpush.bf16.msrb.mxu1 %v4693_v20 }
 0x625   : > { %3205 = vmatpush.bf16.msra.mxu3 %v4677_v26  ;;  %3244 = vmatpush.bf16.msra.mxu2 %v4701_v21  ;;  %v4753_v26 = vld [vmem:[%s6502_s9 + $0x270] sm:$0xff] }
 0x627   : > { %3219 = vmatpush.bf16.msrb.mxu0 %v4684_v22 }
 0x628   : > { %3232 = vmatpush.bf16.msrb.mxu1 %v4692_v23  ;;  %v4761_v23 = vld [vmem:[%s6502_s9 + $0x2b0] sm:$0xff] }
 0x629   : > { %3206 = vmatpush.bf16.msra.mxu3 %v4676_v25  ;;  %3245 = vmatpush.bf16.msra.mxu2 %v4700_v28  ;;  %v4746_v28 = vld [vmem:[%s6502_s9 + $0x238] sm:$0xff] }
 0x62b   : > { %3220 = vmatpush.bf16.msrb.mxu0 %v4683_v30 }
 0x62c   : > { %3233 = vmatpush.bf16.msrb.mxu1 %v4691_v31  ;;  %v4770_v31 = vld [vmem:[%s6502_s9 + $0x2f8] sm:$0xff] }
 0x62d   : > { %3207 = vmatpush.bf16.msra.mxu3 %v4675_v34  ;;  %3246 = vmatpush.bf16.msra.mxu2 %v4699_v36  ;;  %v4760_v34 = vld [vmem:[%s6502_s9 + $0x2a8] sm:$0xff]  ;;  %v1422_v36 = vperm.slane %v6231_v13, 5 }
 0x62f   : > { %3265 = vmatpush.bf16.msra.mxu0 %v4722_v32 }
 0x630   : > { %3278 = vmatpush.bf16.msra.mxu1 %v4730_v33  ;;  %v4752_v33 = vld [vmem:[%s6502_s9 + $0x268] sm:$0xff] }
 0x631   : > { %3252 = vmatpush.bf16.msrb.mxu3 %v4714_v37  ;;  %3291 = vmatpush.bf16.msrb.mxu2 %v4738_v38  ;;  %v1423_v38 = vperm.slane %v6231_v13, 6 }
 0x633   : > { %3266 = vmatpush.bf16.msra.mxu0 %v4721_v39  ;;  %v4745_v39 = vld [vmem:[%s6502_s9 + $0x230] sm:$0xff] }
 0x634   : > { %3279 = vmatpush.bf16.msra.mxu1 %v4729_v40 }
 0x635   : > { %3253 = vmatpush.bf16.msrb.mxu3 %v4713_v41  ;;  %3292 = vmatpush.bf16.msrb.mxu2 %v4737_v42  ;;  %v4769_v41 = vld [vmem:[%s6502_s9 + $0x2f0] sm:$0xff] }
 0x637   : > { %3267 = vmatpush.bf16.msra.mxu0 %v4720_v43  ;;  %v4751_v43 = vld [vmem:[%s6502_s9 + $0x260] sm:$0xff] }
 0x638   : > { %3280 = vmatpush.bf16.msra.mxu1 %v4728_v44 }
 0x639   : > { %3254 = vmatpush.bf16.msrb.mxu3 %v4712_v45  ;;  %3293 = vmatpush.bf16.msrb.mxu2 %v4736_v46  ;;  %v4759_v46 = vld [vmem:[%s6502_s9 + $0x2a0] sm:$0xff] }
 0x63b   : > { %3268 = vmatpush.bf16.msra.mxu0 %v4719_v29 }
 0x63c   : > { %3281 = vmatpush.bf16.msra.mxu1 %v4727_v48  ;;  %v4744_v48 = vld [vmem:[%s6502_s9 + $0x228] sm:$0xff] }
 0x63d   : > { %3255 = vmatpush.bf16.msrb.mxu3 %v4711_v49  ;;  %3294 = vmatpush.bf16.msrb.mxu2 %v4735_v50  ;;  %v4768_v50 = vld [vmem:[%s6502_s9 + $0x2e8] sm:$0xff] }
 0x63f   : > { %3269 = vmatpush.bf16.msra.mxu0 %v4718_v51  ;;  %v1421_v51 = vperm.slane %v6231_v13, 4 }
 0x640   : > { %3282 = vmatpush.bf16.msra.mxu1 %v4726_v63 }
 0x641   : > { %3256 = vmatpush.bf16.msrb.mxu3 %v4710_v54  ;;  %3295 = vmatpush.bf16.msrb.mxu2 %v4734_v55  ;;  %v4758_v55 = vld [vmem:[%s6502_s9 + $0x298] sm:$0xff] }
 0x643   : > { %3270 = vmatpush.bf16.msra.mxu0 %v4717_v52  ;;  %v1424_v52 = vperm.slane %v6231_v13, 7 }
 0x644   : > { %3283 = vmatpush.bf16.msra.mxu1 %v4725_v53  ;;  %v4750_v53 = vld [vmem:[%s6502_s9 + $0x258] sm:$0xff] }
 0x645   : > { %3257 = vmatpush.bf16.msrb.mxu3 %v4709_v58  ;;  %3296 = vmatpush.bf16.msrb.mxu2 %v4733_v59  ;;  %v4743_v58 = vld [vmem:[%s6502_s9 + $0x220] sm:$0xff] }
 0x647   : > { %3271 = vmatpush.bf16.msra.mxu0 %v4716_v56 }
 0x648   : > { %3284 = vmatpush.bf16.msra.mxu1 %v4724_v57 }
 0x649   : > { %3258 = vmatpush.bf16.msrb.mxu3 %v4708_v62  ;;  %3297 = vmatpush.bf16.msrb.mxu2 %v4732_v0 }
 0x64b   : > { %3272 = vmatpush.bf16.msra.mxu0 %v4715_v60 }
 0x64c   : > { %3285 = vmatpush.bf16.msra.mxu1 %v4723_v61  ;;  %v4767_v61 = vld [vmem:[%s6502_s9 + $0x2e0] sm:$0xff] }
 0x64d   : > { %3259 = vmatpush.bf16.msrb.mxu3 %v4707_v35  ;;  %3298 = vmatpush.bf16.msrb.mxu2 %v4731_v1  ;;  %v4749_v35 = vld [vmem:[%s6502_s9 + $0x250] sm:$0xff] }
 0x65a   : > { %v1954_v4 = vpop.f32.mrf.mxu0 }
 0x65b   : > { %v1955_v5 = vadd.f32 %v1954_v4, %v1418_v2  ;;  %v1967_v6 = vpop.f32.mrf.mxu1  ;;  %v4757_v2 = vld [vmem:[%s6502_s9 + $0x290] sm:$0xff]  ;;  %v4742_v4 = vld [vmem:[%s6502_s9 + $0x218] sm:$0xff] }
 0x65c   : > { %v1968_v7 = vadd.f32 %v1967_v6, %v1419_v3 }
 0x65d   : > { %v2141_v27 = vmax.f32 %v1955_v5, 0.0  ;;  %v6307_v5 = vld [vmem:[%s6501_s8 + $0x8] sm:$0xff] }
 0x65e   : > { %v2142_v9 = vmax.f32 %v1968_v7, 0.0  ;;  %v4766_v7 = vld [vmem:[%s6502_s9 + $0x2d8] sm:$0xff] }
 0x65f   : > { %v2157_v12 = vpack.c.bf16 %v2141_v27, %v2141_v27 }
 0x660   : > { %v2158_v15 = vpack.c.bf16 %v2142_v9, %v2142_v9  ;;  %v1941_v16 = vpop.f32.mrf.mxu3  ;;  %v4756_v9 = vld [vmem:[%s6502_s9 + $0x288] sm:$0xff] }
 0x661   : > { %v1942_v17 = vadd.f32 %v1941_v16, %v1417_v8  ;;  %v1980_v18 = vpop.f32.mrf.mxu2  ;;  %3221 = vmatmul.bf16.vlgmr.msrb.gmra.mxu0 %v2157_v12  ;;  %v4748_v8 = vld [vmem:[%s6502_s9 + $0x248] sm:$0xff]  ;;  %v1427_v12 = vperm.slane %v6307_v5, 2  ;;  %v4765_v16 = vld [vmem:[%s6502_s9 + $0x2d0] sm:$0xff] }
 0x662   : > { %v1981_v19 = vadd.f32 %v1980_v18, %v1420_v10  ;;  %3234 = vmatmul.bf16.vlgmr.msrb.gmra.mxu1 %v2158_v15  ;;  %3317 = vmatpush.bf16.msrb.mxu0 %v4754_v11  ;;  %v1956_v20 = vpop.f32.mrf.mxu0  ;;  %v1426_v10 = vperm.slane %v6307_v5, 1  ;;  %v4747_v18 = vld [vmem:[%s6502_s9 + $0x240] sm:$0xff] }
 0x663   : > { %v2140_v21 = vmax.f32 %v1942_v17, 0.0  ;;  %3330 = vmatpush.bf16.msrb.mxu1 %v4762_v14  ;;  %v1969_v22 = vpop.f32.mrf.mxu1  ;;  %v4741_v14 = vld [vmem:[%s6502_s9 + $0x210] sm:$0xff] }
 0x664   : > { %v2143_v25 = vmax.f32 %v1981_v19, 0.0 }
 0x665   : > { %v2156_v30 = vpack.c.bf16 %v2140_v21, %v2140_v21  ;;  %v4786_v21 = vld [vmem:[%s6502_s9 + $0x378] sm:$0xff] }
 0x666   : > { %v2159_v32 = vpack.c.bf16 %v2143_v25, %v2143_v25  ;;  %3318 = vmatpush.bf16.msrb.mxu0 %v4753_v26  ;;  %v4755_v26 = vld [vmem:[%s6502_s9 + $0x280] sm:$0xff]  ;;  %v4740_v25 = vld [vmem:[%s6502_s9 + $0x208] sm:$0xff] }
 0x667   : > { %3331 = vmatpush.bf16.msrb.mxu1 %v4761_v23  ;;  %3208 = vmatmul.bf16.vlgmr.msra.gmra.mxu3 %v2156_v30  ;;  %v4794_v23 = vld [vmem:[%s6502_s9 + $0x3b8] sm:$0xff]  ;;  %v4764_v30 = vld [vmem:[%s6502_s9 + $0x2c8] sm:$0xff] }
 0x668   : > { %3247 = vmatmul.bf16.vlgmr.msra.gmra.mxu2 %v2159_v32  ;;  %3304 = vmatpush.bf16.msra.mxu3 %v4746_v28  ;;  %v1943_v37 = vpop.f32.mrf.mxu3 }
 0x669   : > { %3343 = vmatpush.bf16.msra.mxu2 %v4770_v31  ;;  %v1982_v40 = vpop.f32.mrf.mxu2  ;;  %v1425_v31 = vperm.slane %v6307_v5, 0 }
 0x66a   : > { %3319 = vmatpush.bf16.msrb.mxu0 %v4752_v33  ;;  %v2006_v42 = vpop.f32.mrf.mxu0  ;;  %v1428_v33 = vperm.slane %v6307_v5, 3  ;;  %v4739_v40 = vld [vmem:[%s6502_s9 + $0x200] sm:$0xff] }
 0x66b   : > { %3332 = vmatpush.bf16.msrb.mxu1 %v4760_v34  ;;  %v2007_v44 = vadd.f32 %v2006_v42, %v1422_v36  ;;  %v2019_v45 = vpop.f32.mrf.mxu1  ;;  %v4785_v36 = vld [vmem:[%s6502_s9 + $0x370] sm:$0xff] }
 0x66c   : > { %v2020_v29 = vadd.f32 %v2019_v45, %v1423_v38  ;;  %3305 = vmatpush.bf16.msra.mxu3 %v4745_v39  ;;  %v4793_v39 = vld [vmem:[%s6502_s9 + $0x3b0] sm:$0xff] }
 0x66d   : > { %v2145_v49 = vmax.f32 %v2007_v44, 0.0  ;;  %3344 = vmatpush.bf16.msra.mxu2 %v4769_v41  ;;  %v4778_v44 = vld [vmem:[%s6502_s9 + $0x338] sm:$0xff] }
 0x66e   : > { %v2146_v63 = vmax.f32 %v2020_v29, 0.0  ;;  %3320 = vmatpush.bf16.msrb.mxu0 %v4751_v43  ;;  %v4763_v43 = vld [vmem:[%s6502_s9 + $0x2c0] sm:$0xff]  ;;  %v4802_v29 = vld [vmem:[%s6502_s9 + $0x3f8] sm:$0xff] }
 0x66f   : > { %v2161_v54 = vpack.c.bf16 %v2145_v49, %v2145_v49  ;;  %3333 = vmatpush.bf16.msrb.mxu1 %v4759_v46 }
 0x670   : > { %v2162_v56 = vpack.c.bf16 %v2146_v63, %v2146_v63  ;;  %3306 = vmatpush.bf16.msra.mxu3 %v4744_v48  ;;  %v1993_v57 = vpop.f32.mrf.mxu3  ;;  %v4792_v63 = vld [vmem:[%s6502_s9 + $0x3a8] sm:$0xff] }
 0x671   : > { %3345 = vmatpush.bf16.msra.mxu2 %v4768_v50  ;;  %v1994_v59 = vadd.f32 %v1993_v57, %v1421_v51  ;;  %v2032_v60 = vpop.f32.mrf.mxu2  ;;  %3273 = vmatmul.bf16.vlgmr.msra.gmra.mxu0 %v2161_v54  ;;  %v4784_v50 = vld [vmem:[%s6502_s9 + $0x368] sm:$0xff] }
 0x672   : > { %v2033_v62 = vadd.f32 %v2032_v60, %v1424_v52  ;;  %3286 = vmatmul.bf16.vlgmr.msra.gmra.mxu1 %v2162_v56  ;;  %3321 = vmatpush.bf16.msrb.mxu0 %v4750_v53  ;;  %v2008_v0 = vpop.f32.mrf.mxu0  ;;  %v4777_v53 = vld [vmem:[%s6502_s9 + $0x330] sm:$0xff]  ;;  %v4783_v56 = vld [vmem:[%s6502_s9 + $0x360] sm:$0xff]  ;;  %v4776_v60 = vld [vmem:[%s6502_s9 + $0x328] sm:$0xff] }
 0x673   : > { %v2144_v1 = vmax.f32 %v1994_v59, 0.0  ;;  %3334 = vmatpush.bf16.msrb.mxu1 %v4758_v55  ;;  %v2021_v13 = vpop.f32.mrf.mxu1  ;;  %v4801_v55 = vld [vmem:[%s6502_s9 + $0x3f0] sm:$0xff]  ;;  %v4782_v0 = vld [vmem:[%s6502_s9 + $0x358] sm:$0xff] }
 0x674   : > { %v2147_v3 = vmax.f32 %v2033_v62, 0.0  ;;  %3307 = vmatpush.bf16.msra.mxu3 %v4743_v58  ;;  %v4791_v58 = vld [vmem:[%s6502_s9 + $0x3a0] sm:$0xff] }
 0x675   : > { %v2160_v6 = vpack.c.bf16 %v2144_v1, %v2144_v1  ;;  %3346 = vmatpush.bf16.msra.mxu2 %v4767_v61  ;;  %v4800_v61 = vld [vmem:[%s6502_s9 + $0x3e8] sm:$0xff]  ;;  %v4790_v1 = vld [vmem:[%s6502_s9 + $0x398] sm:$0xff]  ;;  %v4775_v13 = vld [vmem:[%s6502_s9 + $0x320] sm:$0xff] }
 0x676   : > { %v2163_v27 = vpack.c.bf16 %v2147_v3, %v2147_v3  ;;  %3322 = vmatpush.bf16.msrb.mxu0 %v4749_v35  ;;  %v4781_v3 = vld [vmem:[%s6502_s9 + $0x350] sm:$0xff] }
 0x677   : > { %3335 = vmatpush.bf16.msrb.mxu1 %v4757_v2  ;;  %3260 = vmatmul.bf16.vlgmr.msrb.gmra.mxu3 %v2160_v6  ;;  %v4799_v2 = vld [vmem:[%s6502_s9 + $0x3e0] sm:$0xff]  ;;  %v4789_v6 = vld [vmem:[%s6502_s9 + $0x390] sm:$0xff] }
 0x678   : > { %3299 = vmatmul.bf16.vlgmr.msrb.gmra.mxu2 %v2163_v27  ;;  %3308 = vmatpush.bf16.msra.mxu3 %v4742_v4  ;;  %v1995_v11 = vpop.f32.mrf.mxu3  ;;  %v1430_v4 = vperm.slane %v6307_v5, 5 }
 0x679   : > { %3347 = vmatpush.bf16.msra.mxu2 %v4766_v7  ;;  %v2034_v15 = vpop.f32.mrf.mxu2  ;;  %v1431_v7 = vperm.slane %v6307_v5, 6 }
 0x67a   : > { %3323 = vmatpush.bf16.msrb.mxu0 %v4748_v8  ;;  %v2058_v17 = vpop.f32.mrf.mxu0  ;;  %v4774_v8 = vld [vmem:[%s6502_s9 + $0x318] sm:$0xff] }
 0x67b   : > { %3336 = vmatpush.bf16.msrb.mxu1 %v4756_v9  ;;  %v2059_v19 = vadd.f32 %v2058_v17, %v1426_v10  ;;  %v2071_v20 = vpop.f32.mrf.mxu1  ;;  %v4798_v10 = vld [vmem:[%s6502_s9 + $0x3d8] sm:$0xff] }
 0x67c   : > { %v2072_v22 = vadd.f32 %v2071_v20, %v1427_v12  ;;  %3309 = vmatpush.bf16.msra.mxu3 %v4741_v14  ;;  %v4780_v12 = vld [vmem:[%s6502_s9 + $0x348] sm:$0xff]  ;;  %v4797_v20 = vld [vmem:[%s6502_s9 + $0x3d0] sm:$0xff] }
 0x67d   : > { %v2149_v28 = vmax.f32 %v2059_v19, 0.0  ;;  %3348 = vmatpush.bf16.msra.mxu2 %v4765_v16  ;;  %v4788_v16 = vld [vmem:[%s6502_s9 + $0x388] sm:$0xff]  ;;  %v1429_v19 = vperm.slane %v6307_v5, 4 }
 0x67e   : > { %v2150_v32 = vmax.f32 %v2072_v22, 0.0  ;;  %3324 = vmatpush.bf16.msrb.mxu0 %v4747_v18  ;;  %v4773_v18 = vld [vmem:[%s6502_s9 + $0x310] sm:$0xff] }
 0x67f   : > { %v2165_v34 = vpack.c.bf16 %v2149_v28, %v2149_v28  ;;  %3337 = vmatpush.bf16.msrb.mxu1 %v4755_v26  ;;  %v1432_v26 = vperm.slane %v6307_v5, 7 }
 0x680   : > { %v2166_v37 = vpack.c.bf16 %v2150_v32, %v2150_v32  ;;  %3310 = vmatpush.bf16.msra.mxu3 %v4740_v25  ;;  %v2045_v38 = vpop.f32.mrf.mxu3  ;;  %v4796_v32 = vld [vmem:[%s6502_s9 + $0x3c8] sm:$0xff] }
 0x681   : > { %3349 = vmatpush.bf16.msra.mxu2 %v4764_v30  ;;  %v2046_v41 = vadd.f32 %v2045_v38, %v1425_v31  ;;  %v2084_v42 = vpop.f32.mrf.mxu2  ;;  %3325 = vmatmul.bf16.vlgmr.msrb.gmra.mxu0 %v2165_v34  ;;  %v4772_v30 = vld [vmem:[%s6502_s9 + $0x308] sm:$0xff] }
 0x682   : > { %3369 = vmatpush.bf16.msra.mxu0 %v4786_v21  ;;  %v2085_v45 = vadd.f32 %v2084_v42, %v1428_v33  ;;  %3338 = vmatmul.bf16.vlgmr.msrb.gmra.mxu1 %v2166_v37  ;;  %v2060_v46 = vpop.f32.mrf.mxu0  ;;  %v4779_v21 = vld [vmem:[%s6502_s9 + $0x340] sm:$0xff] }
 0x683   : > { %3382 = vmatpush.bf16.msra.mxu1 %v4794_v23  ;;  %v2148_v48 = vmax.f32 %v2046_v41, 0.0  ;;  %v2073_v49 = vpop.f32.mrf.mxu1  ;;  %v4787_v23 = vld [vmem:[%s6502_s9 + $0x380] sm:$0xff] }
 0x684   : > { %v2151_v51 = vmax.f32 %v2085_v45, 0.0  ;;  %3311 = vmatpush.bf16.msra.mxu3 %v4739_v40  ;;  %v4771_v37 = vld [vmem:[%s6502_s9 + $0x300] sm:$0xff] }
 0x685   : > { %v2164_v52 = vpack.c.bf16 %v2148_v48, %v2148_v48  ;;  %3350 = vmatpush.bf16.msra.mxu2 %v4763_v43 }
 0x686   : > { %3370 = vmatpush.bf16.msra.mxu0 %v4785_v36  ;;  %v2167_v54 = vpack.c.bf16 %v2151_v51, %v2151_v51 }
 0x687   : > { %3383 = vmatpush.bf16.msra.mxu1 %v4793_v39  ;;  %3312 = vmatmul.bf16.vlgmr.msra.gmra.mxu3 %v2164_v52  ;;  %v4795_v39 = vld [vmem:[%s6502_s9 + $0x3c0] sm:$0xff] }
 0x688   : > { %3356 = vmatpush.bf16.msrb.mxu3 %v4778_v44  ;;  %3351 = vmatmul.bf16.vlgmr.msra.gmra.mxu2 %v2167_v54  ;;  %v2047_v57 = vpop.f32.mrf.mxu3  ;;  %v4867_v54 = vld [vmem:[%s6503_s10] ss:$0 sm:$0xff] }
 0x689   : > { %3395 = vmatpush.bf16.msrb.mxu2 %v4802_v29  ;;  %v2086_v59 = vpop.f32.mrf.mxu2 }
 0x68a   : > { %3371 = vmatpush.bf16.msra.mxu0 %v4784_v50 }
 0x68b   : > { %3384 = vmatpush.bf16.msra.mxu1 %v4792_v63  ;;  %v2110_v62 = vpop.f32.mrf.mxu0 }
 0x68c   : > { %3357 = vmatpush.bf16.msrb.mxu3 %v4777_v53  ;;  %v2123_v35 = vpop.f32.mrf.mxu1  ;;  %v2111_v14 = vadd.f32 %v2110_v62, %v1430_v4 }
 0x68d   : > { %3396 = vmatpush.bf16.msrb.mxu2 %v4801_v55  ;;  %v2124_v17 = vadd.f32 %v2123_v35, %v1431_v7 }
 0x68e   : > { %3372 = vmatpush.bf16.msra.mxu0 %v4783_v56  ;;  %v2153_v22 = vmax.f32 %v2111_v14, 0.0 }
 0x68f   : > { %3385 = vmatpush.bf16.msra.mxu1 %v4791_v58  ;;  %v2154_v25 = vmax.f32 %v2124_v17, 0.0 }
 0x690   : > { %3358 = vmatpush.bf16.msrb.mxu3 %v4776_v60  ;;  %v2169_v34 = vpack.c.bf16 %v2153_v22, %v2153_v22 }
 0x691   : > { %3397 = vmatpush.bf16.msrb.mxu2 %v4800_v61  ;;  %v2097_v27 = vpop.f32.mrf.mxu3  ;;  %v2170_v36 = vpack.c.bf16 %v2154_v25, %v2154_v25 }
 0x692   : > { %3373 = vmatpush.bf16.msra.mxu0 %v4782_v0  ;;  %v2098_v31 = vadd.f32 %v2097_v27, %v1429_v19 }
 0x693   : > { %3386 = vmatpush.bf16.msra.mxu1 %v4790_v1  ;;  %v2136_v9 = vpop.f32.mrf.mxu2  ;;  %v2112_v11 = vpop.f32.mrf.mxu0 }
 0x694   : > { %3359 = vmatpush.bf16.msrb.mxu3 %v4775_v13  ;;  %v2125_v15 = vpop.f32.mrf.mxu1  ;;  %v2137_v33 = vadd.f32 %v2136_v9, %v1432_v26  ;;  %v2152_v38 = vmax.f32 %v2098_v31, 0.0 }
 0x695   : > { %3398 = vmatpush.bf16.msrb.mxu2 %v4799_v2 }
 0x696   : > { %3374 = vmatpush.bf16.msra.mxu0 %v4781_v3  ;;  %v2155_v40 = vmax.f32 %v2137_v33, 0.0  ;;  %v2168_v41 = vpack.c.bf16 %v2152_v38, %v2152_v38 }
 0x697   : > { %3387 = vmatpush.bf16.msra.mxu1 %v4789_v6 }
 0x698   : > { %3360 = vmatpush.bf16.msrb.mxu3 %v4774_v8  ;;  %v2171_v42 = vpack.c.bf16 %v2155_v40, %v2155_v40 }
 0x699   : > { %3399 = vmatpush.bf16.msrb.mxu2 %v4798_v10  ;;  %v2099_v28 = vpop.f32.mrf.mxu3 }
 0x69a   : > { %3375 = vmatpush.bf16.msra.mxu0 %v4780_v12 }
 0x69b   : > { %3388 = vmatpush.bf16.msra.mxu1 %v4788_v16  ;;  %v2138_v5 = vpop.f32.mrf.mxu2 }
 0x69c   : > { %3361 = vmatpush.bf16.msrb.mxu3 %v4773_v18 }
 0x69d   : > { %3400 = vmatpush.bf16.msrb.mxu2 %v4797_v20 }
 0x69e   : > { %3376 = vmatpush.bf16.msra.mxu0 %v4779_v21 }
 0x69f   : > { %3389 = vmatpush.bf16.msra.mxu1 %v4787_v23 }
 0x6a0   : > { %3362 = vmatpush.bf16.msrb.mxu3 %v4772_v30 }
 0x6a1   : > { %3401 = vmatpush.bf16.msrb.mxu2 %v4796_v32  ;;  %3377 = vmatmul.bf16.vlgmr.msra.gmra.mxu0 %v2169_v34 }
 0x6a2   : > { %3390 = vmatmul.bf16.vlgmr.msra.gmra.mxu1 %v2170_v36 }
 0x6a4   : > { %3363 = vmatpush.bf16.msrb.mxu3 %v4771_v37 }
 0x6a5   : > { %3402 = vmatpush.bf16.msrb.mxu2 %v4795_v39 }
 0x6a7   : > { %3364 = vmatmul.bf16.vlgmr.msrb.gmra.mxu3 %v2168_v41 }
 0x6a8   : > { %3403 = vmatmul.bf16.vlgmr.msrb.gmra.mxu2 %v2171_v42 }
 0x6de   : > { %v3222_v43 = vpop.f32.mrf.mxu0 }
 0x6df   : > { %v3235_v44 = vpop.f32.mrf.mxu1 }
 0x6e6   : > { %v3224_v45 = vpop.f32.mrf.mxu0 }
 0x6e7   : > { %v3237_v46 = vpop.f32.mrf.mxu1  ;;  %v4868_v45 = vld [vmem:[%s6504_s11] ss:$0 sm:$0xff] }
 0x6ea   : > { %v3209_v29 = vpop.f32.mrf.mxu3 }
 0x6eb   : > { %v3248_v48 = vpop.f32.mrf.mxu2  ;;  %v3210_v57 = vadd.f32 %v4867_v54, %v3209_v29  ;;  %v4869_v29 = vld [vmem:[%s6505_s12] ss:$0 sm:$0xff] }
 0x6ed   : > { %v3223_v60 = vadd.f32 %v3222_v43, %v3210_v57 }
 0x6ee   : > { %v3274_v49 = vpop.f32.mrf.mxu0 }
 0x6ef   : > { %v3287_v50 = vpop.f32.mrf.mxu1  ;;  %v3236_v0 = vadd.f32 %v3235_v44, %v3223_v60 }
 0x6f1   : > { %v3249_v13 = vadd.f32 %v3248_v48, %v3236_v0 }
 0x6f2   : > { %v3211_v51 = vpop.f32.mrf.mxu3 }
 0x6f3   : > { %v3250_v63 = vpop.f32.mrf.mxu2 }
 0x6f6   : > { %v3276_v52 = vpop.f32.mrf.mxu0 }
 0x6f7   : > { %v3289_v53 = vpop.f32.mrf.mxu1 }
 0x6fa   : > { %v3261_v55 = vpop.f32.mrf.mxu3 }
 0x6fb   : > { %v3300_v56 = vpop.f32.mrf.mxu2  ;;  %v3262_v4 = vadd.f32 %v3261_v55, %v3249_v13 }
 0x6fd   : > { %v3275_v6 = vadd.f32 %v3274_v49, %v3262_v4 }
 0x6fe   : > { %v3326_v58 = vpop.f32.mrf.mxu0 }
 0x6ff   : > { %v3339_v59 = vpop.f32.mrf.mxu1  ;;  %v3288_v8 = vadd.f32 %v3287_v50, %v3275_v6 }
 0x701   : > { %v3301_v9 = vadd.f32 %v3300_v56, %v3288_v8 }
 0x702   : > { %v3263_v61 = vpop.f32.mrf.mxu3 }
 0x703   : > { %v3302_v62 = vpop.f32.mrf.mxu2 }
 0x706   : > { %v3328_v35 = vpop.f32.mrf.mxu0 }
 0x707   : > { %v3341_v1 = vpop.f32.mrf.mxu1 }
 0x70a   : > { %v3313_v2 = vpop.f32.mrf.mxu3 }
 0x70b   : > { %v3352_v3 = vpop.f32.mrf.mxu2  ;;  %v3314_v10 = vadd.f32 %v3313_v2, %v3301_v9 }
 0x70d   : > { %v3327_v14 = vadd.f32 %v3326_v58, %v3314_v10 }
 0x70f   : > { %v3340_v15 = vadd.f32 %v3339_v59, %v3327_v14 }
 0x711   : > { %v3353_v18 = vadd.f32 %v3352_v3, %v3340_v15 }
 0x712   : > { %v3315_v7 = vpop.f32.mrf.mxu3 }
 0x713   : > { %v3354_v27 = vpop.f32.mrf.mxu2 }
 0x71e   : > { %v3378_v11 = vpop.f32.mrf.mxu0 }
 0x71f   : > { %v3391_v12 = vpop.f32.mrf.mxu1 }
 0x726   : > { %v3380_v16 = vpop.f32.mrf.mxu0 }
 0x727   : > { %v3393_v17 = vpop.f32.mrf.mxu1 }
 0x72a   : > { %v3365_v19 = vpop.f32.mrf.mxu3 }
 0x72b   : > { %v3366_v20 = vadd.f32 %v3365_v19, %v3353_v18  ;;  %v3404_v26 = vpop.f32.mrf.mxu2 }
 0x72d   : > { %v3379_v21 = vadd.f32 %v3378_v11, %v3366_v20 }
 0x72f   : > { %v3392_v22 = vadd.f32 %v3391_v12, %v3379_v21 }
 0x731   : > { %v3405_v23 = vadd.f32 %v3404_v26, %v3392_v22 }
 0x732   : > { %v3367_v25 = vpop.f32.mrf.mxu3 }
 0x733   : > { %v3406_v28 = vpop.f32.mrf.mxu2  ;;  %v3408_v30 = vadd.f32 %v3405_v23, %v5725_v47 }
 0x735   : > { %v3411_v31 = vsel %vm567_vm0, %v3408_v30, 0.0 }
 0x736   : > { %3412 = vadd.xlane.f32.xlu1 %v3411_v31 }
 0x7a9   : > { %v3413_v5 = vpop.xlane.xlu1 %3412 }
 0x7aa   : > { %v3414_v32 = vmul.f32 %v3413_v5, %v5454_v24 }
 0x7ac   : > { %v3415_v33 = vsub.f32 %v3408_v30, %v3414_v32 }
 0x7ae   : > { %v3416_v34 = vmul.f32 %v3415_v33, %v3415_v33 }
 0x7b0   : > { %v3417_v36 = vsel %vm567_vm0, %v3416_v34, 0.0 }
 0x7b1   : > { %3418 = vadd.xlane.f32.xlu0 %v3417_v36 }
 0x824   : > { %v3419_v37 = vpop.xlane.xlu0 %3418 }
 0x825   : > { %v3420_v38 = vmul.f32 %v3419_v37, %v5454_v24 }
 0x827   : > { %v3421_v39 = vadd.f32 1e-05, %v3420_v38 }
 0x829   : > { %4906 = vrsqrt.f32 %v3421_v39  ;;  %vm3428_vm2 = vweird.f32 %v3421_v39 }
 0x82f   : > { %v4907_v40 = vpop.eup %4906 }
 0x830   : > { %v3423_v47 = vmul.f32 %v4907_v40, %v3421_v39  ;;  %vm3429_vm1 = vweird.f32 %v4907_v40 }
 0x831   : > { %vm3430_vm3 = vmor %vm3428_vm2, %vm3429_vm1 }
 0x832   : > { %v3424_v41 = vmul.f32 %v4907_v40, %v3423_v47 }
 0x834   : > { %v3425_v42 = vmul.f32 0.5, %v3424_v41 }
 0x836   : > { %v3426_v43 = vsub.f32 1.5, %v3425_v42 }
 0x838   : > { %v3427_v44 = vmul.f32 %v4907_v40, %v3426_v43 }
 0x83a   : > { %v3431_v24 = vsel %vm3430_vm3, %v4907_v40, %v3427_v44 }
 0x83b   : > { %v3432_v46 = vmul.f32 %v3431_v24, %v3415_v33 }
 0x83d   : > { %v3436_v48 = vmul.f32 %v4868_v45, %v3432_v46 }
 0x83f   : > { %v3440_v49 = vadd.f32 %v4869_v29, %v3436_v48 }
 0x841   : > { %3441 = vst.msk [vmem:[%s431_s27] sm:$0xff] %vm567_vm0, %v3440_v49 }
 0x842   : > { %4935 = shalt.err (!%p4932_p3)
}
 0x843   : > { %4803 = dma.vmem_to_hbm [thread:$0]  (%p5097_p5), %s3456_s29, 128, %s3458_s17, %s3443_s30  }
 0x844 PF: > { %p4809_p4 = scmp.ge.s32.totalorder %s4970_s28, 2  ;;  %s3469_s24 = sand.u32 1, %s4958_s25  }
 0x845   : > { %s3470_s27 = scalar_lea.sflag [#allocation3], %s3469_s24 }
 0x846   : > { %p4806_p7 = pnand %p4809_p4, %p5101_p6 }
 0x848   : > { %p4807_p8 = pneg %p4806_p7 }
 0x84a   : > { %4953 = dma.done.wait (%p4807_p8), %s3470_s27, 128  }
 0x84b   : > { %4955 = vsyncadd (%p4807_p8), %s3470_s27, 4294967168  ;;  %s6518_s28 = sld [smem:[#allocation6_spill]]  ;;  %s6521_s25 = smov %s4962_s26 }
 0x84c   : > { %s6519_s15 = sld [smem:[#allocation5_spill]] }
 0x84d   : > { %s6520_s27 = sld [smem:[#allocation7_spill]] }
 0x851   : > { %p23_p9 = scmp.ge.s32.totalorder %s6518_s28, 4  }
 0x852   : > { %s6522_s26 = smov %s6519_s15 }
 0x853   :  { %25 = sbr.rel (!%p23_p9) target bundleno = 3 (0x3), region = 107 }
 0x858   :  { %3476 = vsyncpa [#allocation3], 1 }
 0x859   :  { %3478 = vsyncpa [#allocation3 + $0x1], 1 }

</bundles_post_ra>
